<compile_context>
chip_gen: v7x
topology: tpu7x:2x2x1
jax: 0.10.0
libtpu: 0.0.40
codegen_flags: <defaults>
</compile_context>

<pallas_src>
import jax
import jax.numpy as jnp
from jax.experimental import pallas as pl
from jax.experimental.pallas import tpu as pltpu


def _self_attn_kernel(x_ref, xq_ref, m_ref, bqwk_ref, wv_ref, bv_ref,
                      out_ref, keff_ref, v_ref, r_ref):
    # Per-batch projections, hoisted to the first query tile of each batch.
    # The query grid axis is "arbitrary" (sequential), so this scratch stays
    # valid for the remaining query tiles of the same batch element.
    @pl.when(pl.program_id(1) == 0)
    def _():
        x = x_ref[0]                                            # (C, N) f32
        # K_eff = (Wq^T Wk) @ x : Q/K projections folded into one C-deep matmul.
        keff_ref[...] = jnp.dot(
            m_ref[...], x, preferred_element_type=jnp.float32
        ).astype(keff_ref.dtype)
        # r[j] = (bq^T Wk) . x[:, j] : the only bias term that survives the
        # row softmax (row-constant terms cancel under max-subtraction).
        r_ref[...] = jnp.dot(bqwk_ref[...], x,
                             preferred_element_type=jnp.float32)
        # V = Wv @ x + bv
        v_ref[...] = (
            jnp.dot(wv_ref[...], x, preferred_element_type=jnp.float32)
            + bv_ref[...]
        ).astype(v_ref.dtype)

    # energy[i, j] = sum_c xq[c, i] * K_eff[c, j] + r[j]        -> (TQ, N)
    xq = xq_ref[0].astype(jnp.bfloat16)                         # (C, TQ)
    energy = jax.lax.dot_general(
        xq, keff_ref[...],
        dimension_numbers=(((0,), (0,)), ((), ())),
        preferred_element_type=jnp.float32)
    energy = energy + r_ref[...]                                # broadcast (1, N)

    # Row softmax (numerically stable, f32).
    m = jnp.max(energy, axis=-1, keepdims=True)
    p = jnp.exp(energy - m)
    p = p * pl.reciprocal(jnp.sum(p, axis=-1, keepdims=True), approx=True)

    # out[c, i] = sum_j V[c, j] * attention[i, j]               -> (C, TQ)
    out_ref[0] = jax.lax.dot_general(
        v_ref[...], p.astype(jnp.bfloat16),
        dimension_numbers=(((1,), (1,)), ((), ())),
        preferred_element_type=jnp.float32).astype(out_ref.dtype)


def _pick_query_tile(n):
    # Largest query tile that divides N and is a multiple of 128 (lane-dense
    # output stores); small / irregular N falls back to a single tile.
    for tq in (512, 384, 256, 128):
        if n % tq == 0:
            return tq
    return n


def self_attn_pallas(x_nchw, wq, bq, wk, bk, wv, bv):
    """x_nchw: (B, C, W, H) f32; conv weights squeezed to (out, in). Returns (B, C, W, H)."""
    del bk  # bk only adds a row-constant to energy, which cancels under softmax.
    B, C, W, H = x_nchw.shape
    N = W * H
    tq = _pick_query_tile(N)
    ntq = N // tq

    x_flat = x_nchw.reshape(B, C, N)

    # Fold the Q/K 1x1 convs into the energy contraction (done once, host side).
    m_qk = jnp.dot(wq.T, wk)                 # (C, C)  = Wq^T Wk
    bqwk = jnp.dot(bq[None, :], wk)          # (1, C)  = bq^T Wk
    bv2 = bv.reshape(C, 1)

    out_flat = pl.pallas_call(
        _self_attn_kernel,
        out_shape=jax.ShapeDtypeStruct((B, C, N), jnp.float32),
        grid_spec=pltpu.PrefetchScalarGridSpec(
            num_scalar_prefetch=0,
            grid=(B, ntq),
            in_specs=[
                pl.BlockSpec((1, C, N), lambda b, q: (b, 0, 0)),   # x, resident per batch
                pl.BlockSpec((1, C, tq), lambda b, q: (b, 0, q)),  # x query tile
                pl.BlockSpec((C, C), lambda b, q: (0, 0)),         # Wq^T Wk
                pl.BlockSpec((1, C), lambda b, q: (0, 0)),         # bq^T Wk
                pl.BlockSpec((C, C), lambda b, q: (0, 0)),         # Wv
                pl.BlockSpec((C, 1), lambda b, q: (0, 0)),         # bv
            ],
            out_specs=pl.BlockSpec((1, C, tq), lambda b, q: (b, 0, q)),
            scratch_shapes=[
                pltpu.VMEM((C, N), jnp.bfloat16),   # K_eff = (Wq^T Wk) @ x
                pltpu.VMEM((C, N), jnp.bfloat16),   # V
                pltpu.VMEM((1, N), jnp.float32),    # row bias r = (bq^T Wk) @ x
            ],
        ),
        compiler_params=pltpu.CompilerParams(
            # Batch axis shards across TensorCores; query axis must stay
            # sequential because q == 0 initializes the per-batch scratch.
            dimension_semantics=("parallel", "arbitrary"),
            vmem_limit_bytes=64 * 1024 * 1024,
        ),
    )(x_flat, x_flat, m_qk, bqwk, wv, bv2)

    return out_flat.reshape(B, C, W, H)


def self_attn_reference(x_nchw, wq, bq, wk, bk, wv, bv):
    """Pure-JAX reference mirroring the PyTorch forward exactly (f32)."""
    B, C, W, H = x_nchw.shape
    N = W * H
    x = x_nchw.reshape(B, C, N)
    q = jnp.einsum('oc,bcn->bon', wq, x) + bq[None, :, None]   # (B, C//8, N)
    k = jnp.einsum('oc,bcn->bon', wk, x) + bk[None, :, None]   # (B, C//8, N)
    v = jnp.einsum('oc,bcn->bon', wv, x) + bv[None, :, None]   # (B, C,    N)
    energy = jnp.einsum('bci,bcj->bij', q, k)                  # (B, N, N)
    attention = jax.nn.softmax(energy, axis=-1)
    out = jnp.einsum('bcj,bij->bci', v, attention)             # (B, C, N)
    return out.reshape(B, C, W, H)


if __name__ == "__main__":
    # Small shapes consistent with the module (in_dim >= 8 so in_dim//8 >= 1).
    # N = 256 -> two query tiles of 128: exercises the tiling + scratch hoisting.
    B, C, W, H = 2, 32, 16, 16
    Cq = C // 8

    key = jax.random.PRNGKey(0)
    kx, k1, k2, k3, k4, k5, k6 = jax.random.split(key, 7)

    x = jax.random.normal(kx, (B, C, W, H), dtype=jnp.float32)

    # Deterministic parameter init (1x1 conv weights squeezed to (out, in)).
    scale = 1.0 / (C ** 0.5)
    wq = jax.random.uniform(k1, (Cq, C), jnp.float32, -scale, scale)
    bq = jax.random.uniform(k2, (Cq,), jnp.float32, -scale, scale)
    wk = jax.random.uniform(k3, (Cq, C), jnp.float32, -scale, scale)
    bk = jax.random.uniform(k4, (Cq,), jnp.float32, -scale, scale)
    wv = jax.random.uniform(k5, (C, C), jnp.float32, -scale, scale)
    bv = jax.random.uniform(k6, (C,), jnp.float32, -scale, scale)

    out = jax.block_until_ready(self_attn_pallas(x, wq, bq, wk, bk, wv, bv))
    ref = self_attn_reference(x, wq, bq, wk, bk, wv, bv)

    assert out.shape == (B, C, W, H)
    max_err = jnp.max(jnp.abs(out - ref))
    # bf16 MXU operands with f32 accumulation (flash-attention-style) => relaxed tol.
    assert jnp.allclose(out, ref, atol=2e-2, rtol=2e-2), f"max abs err {max_err}"

    print("KERNEL_OK")
</pallas_src>

<mosaic_0001>
module attributes {stable_mosaic.version = 11 : i64} {
  func.func @_self_attn_kernel(%arg0: i32, %arg1: i32, %arg2: memref<1x32x256xf32, #tpu.memory_space<vmem>>, %arg3: memref<1x32x256xf32, #tpu.memory_space<vmem>>, %arg4: memref<32x32xf32, #tpu.memory_space<vmem>>, %arg5: memref<1x32xf32, #tpu.memory_space<vmem>>, %arg6: memref<32x32xf32, #tpu.memory_space<vmem>>, %arg7: memref<32x1xf32, #tpu.memory_space<vmem>>, %arg8: memref<1x32x256xf32, #tpu.memory_space<vmem>>, %arg9: memref<32x256xbf16, #tpu.memory_space<vmem>>, %arg10: memref<32x256xbf16, #tpu.memory_space<vmem>>, %arg11: memref<1x256xf32, #tpu.memory_space<vmem>>) attributes {dimension_semantics = [#tpu.dimension_semantics<parallel>, #tpu.dimension_semantics<arbitrary>], iteration_bounds = array<i64: 2, 1>, scalar_prefetch = 0 : i64, scratch_operands = 3 : i64, tpu.core_type = #tpu.core_type<tc>, window_params = [{transform_indices = @transform_0, window_bounds = array<i64: 1, 32, 256>}, {transform_indices = @transform_1, window_bounds = array<i64: 1, 32, 256>}, {pipeline_mode = #tpu.pipeline_mode<synchronous>, transform_indices = @transform_2, window_bounds = array<i64: 32, 32>}, {pipeline_mode = #tpu.pipeline_mode<synchronous>, transform_indices = @transform_3, window_bounds = array<i64: 1, 32>}, {pipeline_mode = #tpu.pipeline_mode<synchronous>, transform_indices = @transform_4, window_bounds = array<i64: 32, 32>}, {pipeline_mode = #tpu.pipeline_mode<synchronous>, transform_indices = @transform_5, window_bounds = array<i64: 32, 1>}, {transform_indices = @transform_6, window_bounds = array<i64: 1, 32, 256>}]} {
    %c0_i32 = arith.constant 0 : i32
    %0 = arith.cmpi eq, %arg1, %c0_i32 : i32
    %1 = arith.extui %0 : i1 to i32
    %c0_i32_0 = arith.constant 0 : i32
    %2 = arith.cmpi ne, %1, %c0_i32_0 : i32
    scf.if %2 {
      %c0_15 = arith.constant 0 : index
      %c0_16 = arith.constant 0 : index
      %c0_17 = arith.constant 0 : index
      %27 = vector.load %arg2[%c0_15, %c0_16, %c0_17] : memref<1x32x256xf32, #tpu.memory_space<vmem>>, vector<1x32x256xf32>
      %28 = vector.shape_cast %27 : vector<1x32x256xf32> to vector<32x256xf32>
      %c0_18 = arith.constant 0 : index
      %c0_19 = arith.constant 0 : index
      %29 = vector.load %arg4[%c0_18, %c0_19] : memref<32x32xf32, #tpu.memory_space<vmem>>, vector<32x32xf32>
      %cst_20 = arith.constant dense<0.000000e+00> : vector<32x256xf32>
      %30 = tpu.matmul %29, %28, %cst_20 {dimension_numbers = #tpu.dot_dimension_numbers<[1], [0], [0], [1], [0, 0, 1, 1], [], []>} : vector<32x32xf32>, vector<32x256xf32>, vector<32x256xf32> -> vector<32x256xf32>
      %31 = arith.truncf %30 : vector<32x256xf32> to vector<32x256xbf16>
      %c0_21 = arith.constant 0 : index
      %c0_22 = arith.constant 0 : index
      %32 = vector.load %arg9[%c0_21, %c0_22] : memref<32x256xbf16, #tpu.memory_space<vmem>>, vector<32x256xbf16>
      tpu.vector_store %arg9[%c0_21, %c0_22], %31 {strides = array<i32>} : memref<32x256xbf16, #tpu.memory_space<vmem>>, vector<32x256xbf16>,
      %c0_23 = arith.constant 0 : index
      %c0_24 = arith.constant 0 : index
      %33 = vector.load %arg5[%c0_23, %c0_24] : memref<1x32xf32, #tpu.memory_space<vmem>>, vector<1x32xf32>
      %cst_25 = arith.constant dense<0.000000e+00> : vector<1x256xf32>
      %34 = tpu.matmul %33, %28, %cst_25 {dimension_numbers = #tpu.dot_dimension_numbers<[1], [0], [0], [1], [0, 0, 1, 1], [], []>} : vector<1x32xf32>, vector<32x256xf32>, vector<1x256xf32> -> vector<1x256xf32>
      %c0_26 = arith.constant 0 : index
      %c0_27 = arith.constant 0 : index
      %35 = vector.load %arg11[%c0_26, %c0_27] : memref<1x256xf32, #tpu.memory_space<vmem>>, vector<1x256xf32>
      tpu.vector_store %arg11[%c0_26, %c0_27], %34 {strides = array<i32>} : memref<1x256xf32, #tpu.memory_space<vmem>>, vector<1x256xf32>,
      %c0_28 = arith.constant 0 : index
      %c0_29 = arith.constant 0 : index
      %36 = vector.load %arg6[%c0_28, %c0_29] : memref<32x32xf32, #tpu.memory_space<vmem>>, vector<32x32xf32>
      %cst_30 = arith.constant dense<0.000000e+00> : vector<32x256xf32>
      %37 = tpu.matmul %36, %28, %cst_30 {dimension_numbers = #tpu.dot_dimension_numbers<[1], [0], [0], [1], [0, 0, 1, 1], [], []>} : vector<32x32xf32>, vector<32x256xf32>, vector<32x256xf32> -> vector<32x256xf32>
      %c0_31 = arith.constant 0 : index
      %c0_32 = arith.constant 0 : index
      %38 = vector.load %arg7[%c0_31, %c0_32] : memref<32x1xf32, #tpu.memory_space<vmem>>, vector<32x1xf32>
      %39 = vector.broadcast %38 : vector<32x1xf32> to vector<32x256xf32>
      %40 = arith.addf %37, %39 : vector<32x256xf32>
      %41 = arith.truncf %40 : vector<32x256xf32> to vector<32x256xbf16>
      %c0_33 = arith.constant 0 : index
      %c0_34 = arith.constant 0 : index
      %42 = vector.load %arg10[%c0_33, %c0_34] : memref<32x256xbf16, #tpu.memory_space<vmem>>, vector<32x256xbf16>
      tpu.vector_store %arg10[%c0_33, %c0_34], %41 {strides = array<i32>} : memref<32x256xbf16, #tpu.memory_space<vmem>>, vector<32x256xbf16>,
    } else {
    }
    %c0 = arith.constant 0 : index
    %c0_1 = arith.constant 0 : index
    %c0_2 = arith.constant 0 : index
    %3 = vector.load %arg3[%c0, %c0_1, %c0_2] : memref<1x32x256xf32, #tpu.memory_space<vmem>>, vector<1x32x256xf32>
    %4 = vector.shape_cast %3 : vector<1x32x256xf32> to vector<32x256xf32>
    %5 = arith.truncf %4 : vector<32x256xf32> to vector<32x256xbf16>
    %c0_3 = arith.constant 0 : index
    %c0_4 = arith.constant 0 : index
    %6 = vector.load %arg9[%c0_3, %c0_4] : memref<32x256xbf16, #tpu.memory_space<vmem>>, vector<32x256xbf16>
    %cst = arith.constant dense<0.000000e+00> : vector<256x256xf32>
    %7 = tpu.matmul %5, %6, %cst {dimension_numbers = #tpu.dot_dimension_numbers<[0], [0], [1], [1], [0, 1, 1, 1], [], []>} : vector<32x256xbf16>, vector<32x256xbf16>, vector<256x256xf32> -> vector<256x256xf32>
    %c0_5 = arith.constant 0 : index
    %c0_6 = arith.constant 0 : index
    %8 = vector.load %arg11[%c0_5, %c0_6] : memref<1x256xf32, #tpu.memory_space<vmem>>, vector<1x256xf32>
    %9 = vector.broadcast %8 : vector<1x256xf32> to vector<256x256xf32>
    %10 = arith.addf %7, %9 : vector<256x256xf32>
    %cst_7 = arith.constant dense<0xFF800000> : vector<256xf32>
    %11 = vector.multi_reduction <maximumf>, %10, %cst_7 [1] : vector<256x256xf32> to vector<256xf32>
    %12 = vector.shape_cast %11 : vector<256xf32> to vector<256x1xf32>
    %13 = vector.broadcast %12 : vector<256x1xf32> to vector<256x256xf32>
    %14 = arith.subf %10, %13 : vector<256x256xf32>
    %15 = math.exp %14 : vector<256x256xf32>
    %cst_8 = arith.constant dense<0.000000e+00> : vector<256xf32>
    %16 = vector.multi_reduction <add>, %15, %cst_8 [1] : vector<256x256xf32> to vector<256xf32>
    %17 = vector.shape_cast %16 : vector<256xf32> to vector<256x1xf32>
    %18 = tpu.reciprocal %17 {approx = true} : vector<256x1xf32> -> vector<256x1xf32>
    %19 = vector.broadcast %18 : vector<256x1xf32> to vector<256x256xf32>
    %20 = arith.mulf %15, %19 : vector<256x256xf32>
    %c0_9 = arith.constant 0 : index
    %c0_10 = arith.constant 0 : index
    %21 = vector.load %arg10[%c0_9, %c0_10] : memref<32x256xbf16, #tpu.memory_space<vmem>>, vector<32x256xbf16>
    %22 = arith.truncf %20 : vector<256x256xf32> to vector<256x256xbf16>
    %cst_11 = arith.constant dense<0.000000e+00> : vector<32x256xf32>
    %23 = tpu.matmul %21, %22, %cst_11 {dimension_numbers = #tpu.dot_dimension_numbers<[1], [1], [0], [0], [0, 0, 1, 0], [], []>} : vector<32x256xbf16>, vector<256x256xbf16>, vector<32x256xf32> -> vector<32x256xf32>
    %c0_12 = arith.constant 0 : index
    %c0_13 = arith.constant 0 : index
    %c0_14 = arith.constant 0 : index
    %24 = vector.load %arg8[%c0_12, %c0_13, %c0_14] : memref<1x32x256xf32, #tpu.memory_space<vmem>>, vector<1x32x256xf32>
    %25 = vector.shape_cast %24 : vector<1x32x256xf32> to vector<32x256xf32>
    %26 = vector.shape_cast %23 : vector<32x256xf32> to vector<1x32x256xf32>
    tpu.vector_store %arg8[%c0_12, %c0_13, %c0_14], %26 {strides = array<i32>} : memref<1x32x256xf32, #tpu.memory_space<vmem>>, vector<1x32x256xf32>,
    return
  }
  func.func @transform_0(%arg0: i32, %arg1: i32) -> (i32, i32, i32) {
    %c0_i32 = arith.constant 0 : i32
    %c0_i32_0 = arith.constant 0 : i32
    %c0_i32_1 = arith.constant 0 : i32
    return %arg0, %c0_i32, %c0_i32_0 : i32, i32, i32
  }
  func.func @transform_1(%arg0: i32, %arg1: i32) -> (i32, i32, i32) {
    %c0_i32 = arith.constant 0 : i32
    %c0_i32_0 = arith.constant 0 : i32
    return %arg0, %c0_i32, %arg1 : i32, i32, i32
  }
  func.func @transform_2(%arg0: i32, %arg1: i32) -> (i32, i32) {
    %c0_i32 = arith.constant 0 : i32
    %c0_i32_0 = arith.constant 0 : i32
    %c0_i32_1 = arith.constant 0 : i32
    return %c0_i32, %c0_i32_0 : i32, i32
  }
  func.func @transform_3(%arg0: i32, %arg1: i32) -> (i32, i32) {
    %c0_i32 = arith.constant 0 : i32
    %c0_i32_0 = arith.constant 0 : i32
    %c0_i32_1 = arith.constant 0 : i32
    return %c0_i32, %c0_i32_0 : i32, i32
  }
  func.func @transform_4(%arg0: i32, %arg1: i32) -> (i32, i32) {
    %c0_i32 = arith.constant 0 : i32
    %c0_i32_0 = arith.constant 0 : i32
    %c0_i32_1 = arith.constant 0 : i32
    return %c0_i32, %c0_i32_0 : i32, i32
  }
  func.func @transform_5(%arg0: i32, %arg1: i32) -> (i32, i32) {
    %c0_i32 = arith.constant 0 : i32
    %c0_i32_0 = arith.constant 0 : i32
    %c0_i32_1 = arith.constant 0 : i32
    return %c0_i32, %c0_i32_0 : i32, i32
  }
  func.func @transform_6(%arg0: i32, %arg1: i32) -> (i32, i32, i32) {
    %c0_i32 = arith.constant 0 : i32
    %c0_i32_0 = arith.constant 0 : i32
    return %arg0, %c0_i32, %arg1 : i32, i32, i32
  }
}

</mosaic_0001>

<bundles_post_ra>
// kernel: tpu_custom_call.1
= control target key start
LH: loop header
LB: loop body
LE: loop exit
PB: predicated region body
PF: predicated region fallthrough
CT: control target
= control target key end

     0   :  { %s3570_s0 = inlined_call_operand.hbm [shape: f32[2,32,256], index: 0, kind: input, shape index: {}]   ;;  %s3571_s1 = inlined_call_operand.hbm [shape: f32[2,32,256], index: 1, kind: input, shape index: {}]   ;;  %s3572_s2 = inlined_call_operand.hbm [shape: f32[32,32], index: 2, kind: input, shape index: {}]   ;;  %s3573_s3 = inlined_call_operand.hbm [shape: f32[1,32], index: 3, kind: input, shape index: {}]   ;;  %s3574_s4 = inlined_call_operand.hbm [shape: f32[32,32], index: 4, kind: input, shape index: {}]   ;;  %s3575_s5 = inlined_call_operand.hbm [shape: f32[32,1], index: 5, kind: input, shape index: {}]   ;;  %s3576_s6 = inlined_call_operand.hbm [shape: f32[2,32,256], index: 6, kind: output, shape index: {}]  }
   0x1   :  { %3613 = sst [smem:[#allocation40_spill]] %s3570_s0 }
   0x2   :  { %3614 = sst [smem:[#allocation41_spill]] %s3572_s2 }
   0x3   :  { %3615 = sst [smem:[#allocation42_spill]] %s3573_s3 }
   0x4   :  { %11 = vsyncpa [#allocation6], 0 }
   0x5   :  { %13 = vsyncpa [#allocation6 + $0x1], 0 }
   0x6   :  { %14 = vsyncpa [#allocation9], 0 }
   0x7   :  { %16 = vsyncpa [#allocation9 + $0x1], 0 }
   0x8   :  { %17 = vsyncpa [#allocation12], 0 }
   0x9   :  { %18 = vsyncpa [#allocation15], 0 }
   0xa   :  { %19 = vsyncpa [#allocation7], 0 }
   0xb   :  { %21 = vsyncpa [#allocation7 + $0x1], 0  ;;  %s2504_s21 = smov 0   ;;  %s2506_s22 = smov 0  }
   0xc   :  { %s2508_s23 = smov 0   ;;  %s2510_s24 = smov 0  }
   0xd   :  { %s2512_s25 = smov 0   ;;  %s2514_s26 = smov 0  }
   0xe LB: > { %3616 = sst [smem:[#allocation23_spill]] %s2431_s21  ;;  %s2535_s27 = sadd.s32 4294967295, %s2451_s26   ;;  %s2451_s26 = sphi %s2514_s26, %s27_s26   ;;  %s2447_s25 = sphi %s2512_s25, %s3704_s25   ;;  %s2443_s24 = sphi %s2510_s24, %s3703_s24   ;;  %s2439_s23 = sphi %s2508_s23, %s3702_s23   ;;  %s2435_s22 = sphi %s2506_s22, %s3701_s22   ;;  %s2431_s21 = sphi %s2504_s21, %s3700_s21  }
   0xf   : > { %s1792_s28 = sadd.s32 4294967294, %s2451_s26   ;;  %p59_p0 = scmp.ne.s32.totalorder %s2435_s22, %s2431_s21 }
  0x10   : > { %p3577_p1 = scmp.eq.s32.totalorder %s2535_s27, 0  ;;  %p203_p3 = scmp.eq.s32.totalorder %s1792_s28, 1 }
  0x11   : > { %p1793_p5 = scmp.ge.s32.totalorder %s2451_s26, 1  ;;  %p210_p7 = scmp.lt.s32.totalorder %s2451_s26, 3 }
  0x12   : > { %p2544_p4 = por %p3577_p1, %p59_p0  ;;  %p2549_p6 = por %p203_p3, %p59_p0 }
  0x13   : > { %p2554_p8 = pnand %p1793_p5, %p210_p7  ;;  %s2453_s8 = smov [#allocation10]  }
  0x14   : > { %s3617_s29 = scalar_select %p2544_p4, 1, 0 }
  0x15   : > { %s3618_s30 = scalar_select %p2549_p6, 1, 0 }
  0x16   : > { %s3620_s7 = scalar_select %p2554_p8, 1, 0 }
  0x17   : > { %3619 = sst [smem:[#allocation24_spill]] %s3618_s30  ;;  %s222_s9 = sshll.u32 %s2453_s8, 4  ;;  %s2558_s9 = int_to_ptr.vmem [resolvable:$true] %s222_s9 }
  0x18   : > { %p1892_p9 = pneg %p2554_p8  ;;  %s2454_s11 = smov [#allocation11]  }
  0x19   : > { %s236_s12 = sshll.u32 %s2454_s11, 4  ;;  %s2455_s13 = smov [#allocation13]   ;;  %s2569_s12 = int_to_ptr.vmem [resolvable:$true] %s236_s12 }
  0x1a   : > { %p2565_p11 = pnand %p1892_p9, %p3577_p1  ;;  %s2571_s14 = sshll.u32 %s2455_s13, 4  ;;  %s247_s14 = int_to_ptr.vmem [resolvable:$true] %s2571_s14 }
  0x1b   : > { %s3622_s2 = sld [smem:[#allocation41_spill]] }
  0x1c   : > { %p2581_p13 = pneg %p2565_p11 }
  0x21   : > { %s2181_s17 = scalar_lea.hbm %s3622_s2, 512 }
  0x22   : > { %p2182_p12 = scmp.ne.s32.totalorder %s3622_s2, %s2181_s17  ;;  %p2188_p5 = scmp.lt.u32.totalorder %s2181_s17, %s3622_s2 }
  0x24   : > { %p2184_p0 = pnand %p2581_p13, %p2182_p12 }
  0x26   : > { %p2185_p3 = pneg %p2184_p0 }
  0x28   : > { %p2190_p7 = pnand %p2188_p5, %p2185_p3 }
  0x2a   : > { %2193 = shalt.err (!%p2190_p7)
}
  0x2b   : > { %s2194_s11 = scalar_lea.vmem %s2558_s9, 512  ;;  %p2202_p2 = scmp.lt.s32.totalorder %s2558_s9, %s2558_s9 }
  0x2c   : > { %p2195_p9 = scmp.ne.s32.totalorder %s2558_s9, %s2194_s11  ;;  %p2203_p6 = scmp.lt.s32.totalorder %s2194_s11, %s2194_s11 }
  0x2e   : > { %p2197_p10 = pnand %p2195_p9, %p2581_p13  ;;  %p2204_p12 = por %p2203_p6, %p2202_p2 }
  0x30   : > { %p2198_p1 = pneg %p2197_p10 }
  0x32   : > { %p2205_p0 = pnand %p2204_p12, %p2198_p1 }
  0x34   : > { %2208 = shalt.err (!%p2205_p0)
}
  0x35   : > { %s2456_s13 = smov 128   ;;  %s2457_s15 = smov 8  }
  0x36   : > { %1895 = dma.hbm_to_vmem [thread:$0]  (!%p2565_p11), %s3622_s2, 512, %s2558_s9, [#allocation9], %s2456_s13, %s2456_s13, %s2457_s15  }
  0x37   : > { %s3624_s3 = sld [smem:[#allocation42_spill]] }
  0x3d   : > { %s2209_s28 = scalar_lea.hbm %s3624_s3, 16 }
  0x3e   : > { %p2210_p1 = scmp.ne.s32.totalorder %s3624_s3, %s2209_s28  ;;  %p2216_p10 = scmp.lt.u32.totalorder %s2209_s28, %s3624_s3 }
  0x40   : > { %p2212_p2 = pnand %p2210_p1, %p2581_p13 }
  0x42   : > { %p2213_p6 = pneg %p2212_p2 }
  0x44   : > { %p2218_p3 = pnand %p2216_p10, %p2213_p6 }
  0x46   : > { %2221 = shalt.err (!%p2218_p3)
}
  0x47   : > { %s2222_s9 = scalar_lea.vmem %s2569_s12, 16  ;;  %s2229_s16 = scalar_lea.vmem %s2569_s12, 32 }
  0x48   : > { %p2223_p5 = scmp.ne.s32.totalorder %s2569_s12, %s2222_s9  ;;  %p2230_p12 = scmp.lt.s32.totalorder %s2569_s12, %s2569_s12 }
  0x49   : > { %p2231_p0 = scmp.lt.s32.totalorder %s2229_s16, %s2222_s9 }
  0x4a   : > { %p2225_p7 = pnand %p2223_p5, %p2581_p13 }
  0x4b   : > { %p2232_p1 = por %p2231_p0, %p2230_p12 }
  0x4c   : > { %p2226_p9 = pneg %p2225_p7 }
  0x4e   : > { %p2233_p2 = pnand %p2232_p1, %p2226_p9 }
  0x50   : > { %2236 = shalt.err (!%p2233_p2)
}
  0x51   : > { %1898 = dma.hbm_to_vmem [thread:$0]  (!%p2565_p11), %s3624_s3, 16, %s2569_s12, [#allocation12]  }
  0x52   : > { %s2237_s19 = scalar_lea.hbm %s3574_s4, 512 }
  0x53   : > { %p2238_p6 = scmp.ne.s32.totalorder %s3574_s4, %s2237_s19  ;;  %p2244_p5 = scmp.lt.u32.totalorder %s2237_s19, %s3574_s4 }
  0x55   : > { %p2240_p10 = pnand %p2238_p6, %p2581_p13 }
  0x57   : > { %p2241_p3 = pneg %p2240_p10 }
  0x59   : > { %p2246_p7 = pnand %p2244_p5, %p2241_p3 }
  0x5b   : > { %2249 = shalt.err (!%p2246_p7)
}
  0x5c   : > { %s2250_s16 = scalar_lea.vmem %s247_s14, 512  ;;  %p2258_p1 = scmp.lt.s32.totalorder %s247_s14, %s247_s14 }
  0x5d   : > { %p2251_p9 = scmp.ne.s32.totalorder %s247_s14, %s2250_s16  ;;  %p2259_p2 = scmp.lt.s32.totalorder %s2250_s16, %s2250_s16 }
  0x5f   : > { %p2253_p12 = pnand %p2251_p9, %p2581_p13  ;;  %p2260_p4 = por %p2259_p2, %p2258_p1 }
  0x61   : > { %p2254_p0 = pneg %p2253_p12 }
  0x63   : > { %p2261_p8 = pnand %p2260_p4, %p2254_p0 }
  0x65   : > { %2264 = shalt.err (!%p2261_p8)
}
  0x66   : > { %1901 = dma.hbm_to_vmem [thread:$0]  (!%p2565_p11), %s3574_s4, 512, %s247_s14, [#allocation12], %s2456_s13, %s2456_s13, %s2457_s15  }
  0x67   : > { %s2458_s30 = smov [#allocation14]   ;;  %s2265_s28 = scalar_lea.hbm %s3575_s5, 512 }
  0x68   : > { %s259_s17 = sshll.u32 %s2458_s30, 4  ;;  %p2266_p4 = scmp.ne.s32.totalorder %s3575_s5, %s2265_s28  ;;  %s260_s17 = int_to_ptr.vmem [resolvable:$true] %s259_s17 }
  0x69   : > { %p2272_p10 = scmp.lt.u32.totalorder %s2265_s28, %s3575_s5 }
  0x6a   : > { %p2268_p8 = pnand %p2266_p4, %p2581_p13 }
  0x6c   : > { %p2269_p6 = pneg %p2268_p8 }
  0x6e   : > { %p2274_p3 = pnand %p2272_p10, %p2269_p6 }
  0x70   : > { %2277 = shalt.err (!%p2274_p3)
}
  0x71   : > { %s2278_s14 = scalar_lea.vmem %s260_s17, 512  ;;  %p2286_p12 = scmp.lt.s32.totalorder %s260_s17, %s260_s17 }
  0x72   : > { %p2279_p5 = scmp.ne.s32.totalorder %s260_s17, %s2278_s14  ;;  %p2287_p0 = scmp.lt.s32.totalorder %s2278_s14, %s2278_s14 }
  0x74   : > { %p2281_p7 = pnand %p2279_p5, %p2581_p13  ;;  %p2288_p1 = por %p2287_p0, %p2286_p12 }
  0x76   : > { %p2282_p9 = pneg %p2281_p7 }
  0x78   : > { %p2289_p2 = pnand %p2288_p1, %p2282_p9 }
  0x7a   : > { %2292 = shalt.err (!%p2289_p2)
}
  0x7b   : > { %1904 = dma.hbm_to_vmem [thread:$0]  (!%p2565_p11), %s3575_s5, 512, %s260_s17, [#allocation15], %s2456_s13, %s2456_s13, %s2457_s15  }
  0x7c   : > { %s39_s10 = sadd.s32 1, %s2447_s25  ;;  %s46_s20 = sadd.s32 1, %s2439_s23 }
  0x7d   : > { %p41_p13 = scmp.ge.s32.totalorder %s39_s10, 2  ;;  %p53_p4 = scmp.ne.s32.totalorder %s2439_s23, %s2435_s22 }
  0x7e   : > { %p54_p8 = scmp.eq.s32.totalorder %s2451_s26, 0  ;;  %p1920_p6 = scmp.lt.s32.totalorder %s2451_s26, 2 }
  0x7f   : > { %s3706_s10 = smov (%p41_p13, %s39_s10), 0  ;;  %p3625_p3 = scmp.eq.s32.totalorder %s2535_s27, 1 }
  0x80   : > { %p55_p10 = por %p54_p8, %p53_p4  ;;  %s43_s18 = ssub.s32 %s2447_s25, %s3706_s10 }
  0x81   : > { %p2682_p5 = por %p3625_p3, %p53_p4  ;;  %s273_s19 = sand.u32 1, %s2439_s23  }
  0x82   : > { %p44_p11 = scmp.eq.s32.totalorder %s43_s18, 0  ;;  %s2689_s13 = sshll.u32 %s273_s19, 6 }
  0x83   : > { %s1843_s15 = sshll.u32 %s2447_s25, 10  ;;  %s3627_s0 = sld [smem:[#allocation40_spill]] }
  0x84   : > { %s2693_s17 = scalar_select %p44_p11, %s2439_s23, %s46_s20  }
  0x85   : > { %s277_s9 = scalar_lea.vmem [#allocation5], %s2689_s13  ;;  %p2705_p7 = pnand %p1920_p6, %p55_p10 }
  0x86   : > { %s284_s16 = sshll.u32 %s277_s9, 4  ;;  %s2711_s12 = scalar_lea.sflag [#allocation6], %s273_s19  ;;  %s2709_s16 = int_to_ptr.vmem [resolvable:$true] %s284_s16 }
  0x87   : > { %p2295_p12 = pneg %p2705_p7 }
  0x89   : > { %s2700_s11 = scalar_lea.hbm %s3627_s0, %s1843_s15  ;;  %s2298_s28 = scalar_lea.hbm %s3627_s0, 2048 }
  0x8a   : > { %s2293_s21 = scalar_lea.hbm %s2700_s11, 1024  ;;  %p2299_p2 = scmp.lt.u32.totalorder %s2700_s11, %s3627_s0 }
  0x8b   : > { %p2294_p9 = scmp.ne.s32.totalorder %s2700_s11, %s2293_s21  ;;  %p2300_p13 = scmp.lt.u32.totalorder %s2298_s28, %s2293_s21 }
  0x8c   : > { %p2302_p8 = scmp.lt.u32.totalorder %s2293_s21, %s2700_s11 }
  0x8d   : > { %p2296_p0 = pnand %p2295_p12, %p2294_p9  ;;  %p2301_p4 = por %p2300_p13, %p2299_p2 }
  0x8f   : > { %p2297_p1 = pneg %p2296_p0  ;;  %p2303_p6 = por %p2302_p8, %p2301_p4 }
  0x91   : > { %p2304_p10 = pnand %p2303_p6, %p2297_p1 }
  0x93   : > { %2307 = shalt.err (!%p2304_p10)
}
  0x94   : > { %s2308_s19 = scalar_lea.vmem %s2709_s16, 1024  ;;  %s2459_s20 = smov [#allocation5]  }
  0x95   : > { %p2309_p3 = scmp.ne.s32.totalorder %s2709_s16, %s2308_s19  ;;  %s2313_s18 = sshll.u32 %s2459_s20, 4  ;;  %s2314_s18 = int_to_ptr.vmem [resolvable:$false] %s2313_s18 }
  0x96   : > { %s2315_s8 = scalar_lea.vmem %s2314_s18, 2048  ;;  %p2316_p0 = scmp.lt.s32.totalorder %s2709_s16, %s2314_s18 }
  0x97   : > { %p2311_p11 = pnand %p2309_p3, %p2295_p12  ;;  %p2317_p2 = scmp.lt.s32.totalorder %s2315_s8, %s2308_s19 }
  0x99   : > { %p2312_p9 = pneg %p2311_p11  ;;  %p2318_p13 = por %p2317_p2, %p2316_p0 }
  0x9b   : > { %p2319_p4 = pnand %p2318_p13, %p2312_p9 }
  0x9d   : > { %2322 = shalt.err (!%p2319_p4)
}
  0x9e   : > { %s2460_s21 = smov 256   ;;  %s2461_s28 = smov 16  }
  0x9f   : > { %1908 = dma.hbm_to_vmem [thread:$0]  (!%p2705_p7), %s2700_s11, 1024, %s2709_s16, %s2711_s12, %s2460_s21, %s2460_s21, %s2461_s28  }
  0xa0   : > { %s2747_s20 = scalar_lea.hbm %s3571_s1, %s1843_s15  ;;  %s298_s18 = scalar_lea.vmem [#allocation8], %s2689_s13 }
  0xa1   : > { %s307_s8 = sshll.u32 %s298_s18, 4  ;;  %s294_s0 = sand.u32 1, %s2451_s26   ;;  %s2751_s8 = int_to_ptr.vmem [resolvable:$true] %s307_s8 }
  0xa2   : > { %s2753_s2 = scalar_lea.sflag [#allocation9], %s294_s0  ;;  %s2323_s3 = scalar_lea.hbm %s2747_s20, 1024 }
  0xa3   : > { %p2324_p1 = scmp.ne.s32.totalorder %s2747_s20, %s2323_s3  ;;  %s2328_s16 = scalar_lea.hbm %s3571_s1, 2048 }
  0xa4   : > { %p2329_p10 = scmp.lt.u32.totalorder %s2747_s20, %s3571_s1  ;;  %p2330_p3 = scmp.lt.u32.totalorder %s2328_s16, %s2323_s3 }
  0xa5   : > { %p2326_p8 = pnand %p2324_p1, %p2295_p12  ;;  %p2332_p9 = scmp.lt.u32.totalorder %s2323_s3, %s2747_s20 }
  0xa6   : > { %p2331_p11 = por %p2330_p3, %p2329_p10 }
  0xa7   : > { %p2327_p6 = pneg %p2326_p8 }
  0xa8   : > { %p2333_p0 = por %p2332_p9, %p2331_p11 }
  0xaa   : > { %p2334_p2 = pnand %p2333_p0, %p2327_p6 }
  0xac   : > { %2337 = shalt.err (!%p2334_p2)
}
  0xad   : > { %s2338_s0 = scalar_lea.vmem %s2751_s8, 1024  ;;  %s2462_s13 = smov [#allocation8]  }
  0xae   : > { %p2339_p13 = scmp.ne.s32.totalorder %s2751_s8, %s2338_s0  ;;  %s2343_s19 = sshll.u32 %s2462_s13, 4  ;;  %s2344_s19 = int_to_ptr.vmem [resolvable:$false] %s2343_s19 }
  0xaf   : > { %s2345_s18 = scalar_lea.vmem %s2344_s19, 2048  ;;  %p2346_p8 = scmp.lt.s32.totalorder %s2751_s8, %s2344_s19 }
  0xb0   : > { %p2341_p4 = pnand %p2339_p13, %p2295_p12  ;;  %p2347_p10 = scmp.lt.s32.totalorder %s2345_s18, %s2338_s0 }
  0xb2   : > { %p2342_p1 = pneg %p2341_p4  ;;  %p2348_p3 = por %p2347_p10, %p2346_p8 }
  0xb4   : > { %p2349_p11 = pnand %p2348_p3, %p2342_p1 }
  0xb6   : > { %2352 = shalt.err (!%p2349_p11)
}
  0xb7   : > { %1911 = dma.hbm_to_vmem [thread:$0]  (!%p2705_p7), %s2747_s20, 1024, %s2751_s8, %s2753_s2, %s2460_s21, %s2460_s21, %s2461_s28  }
  0xb8   : > { %p3629_p12 = scmp.ne.s32.totalorder %s3620_s7, 0 }
  0xba   : > { %319 = sbr.rel (%p3629_p12) target bundleno = 1463 (0x5b7), region = 44 }
  0xc1   : > { %s2785_s3 = sand.u32 1, %s2435_s22   ;;  %p3630_p6 = scmp.ne.s32.totalorder %s3617_s29, 0 }
  0xc2   : > { %s2788_s11 = sshll.u32 %s2785_s3, 6  ;;  %s322_s14 = scalar_lea.sflag [#allocation6], %s2785_s3 }
  0xc3   : > { %s325_s15 = scalar_lea.vmem [#allocation5], %s2788_s11 }
  0xc4   : > { %2406 = dma.done.wait (%p3630_p6), %s322_s14, 1024  }
  0xc5   : > { %2408 = vsyncadd (%p3630_p6), %s322_s14, 4294966272  ;;  %s330_s2 = sand.u32 1, %s2535_s27   ;;  %s2798_s21 = scalar_lea.vmem [#allocation8], %s2788_s11 }
  0xc6   : > { %s331_s7 = scalar_lea.sflag [#allocation9], %s330_s2 }
  0xc7   : > { %2410 = dma.done.wait (%p3630_p6), %s331_s7, 1024  }
  0xc8   : > { %2412 = vsyncadd (%p3630_p6), %s331_s7, 4294966272  ;;  %p3631_p7 = scmp.eq.s32.totalorder %s2535_s27, 0 }
  0xca   : > { %2414 = dma.done.wait (%p3631_p7), [#allocation9], 512   ;;  %p3632_p9 = pmov %p3631_p7 }
  0xcb   : > { %p3633_p0 = pmov %p3631_p7 }
  0xcc   : > { %2416 = vsyncadd (%p3632_p9), [#allocation9], 4294966784 }
  0xcd   : > { %2418 = dma.done.wait (%p3633_p0), [#allocation12], 528   ;;  %p3634_p2 = pmov %p3633_p0 }
  0xce   : > { %p3635_p13 = pmov %p3633_p0 }
  0xcf   : > { %2420 = vsyncadd (%p3634_p2), [#allocation12], 4294966768 }
  0xd0   : > { %2422 = dma.done.wait (%p3635_p13), [#allocation15], 512   ;;  %p3636_p4 = pmov %p3633_p0 }
  0xd1   : > { %v3582_v0 = vmov 0.0   ;;  %v392_v1 = vld [vmem:[%s325_s15 + $0x8] sm:$0xff]  ;;  %v394_v2 = vld [vmem:[%s325_s15 + $0x18] sm:$0xff]  ;;  %v391_v3 = vld [vmem:[%s325_s15] sm:$0xff]  ;;  %vm403_vm0 = vcmask 261120   ;;  %v2464_v30 = vmov 0   ;;  %v594_v53 = vlaneseq }
  0xd2   : > { %2424 = vsyncadd (%p3636_p4), [#allocation15], 4294966784  ;;  %480 = vmatprep.mubr.f32.mxu0 %v3582_v0  ;;  %581 = vmatprep.mubr.f32.mxu1 %v3582_v0  ;;  %v1846_v4 = vpack.c.bf16 %v394_v2, %v392_v1  ;;  %v393_v5 = vld [vmem:[%s325_s15 + $0x10] sm:$0xff]  ;;  %v396_v6 = vld [vmem:[%s325_s15 + $0x28] sm:$0xff]  ;;  %v2465_v51 = vmov 1966171168  }
  0xd3   : > { %v398_v7 = vld [vmem:[%s325_s15 + $0x38] sm:$0xff]  ;;  %v1848_v8 = vpack.c.bf16 %v393_v5, %v391_v3  ;;  %v395_v10 = vld [vmem:[%s325_s15 + $0x20] sm:$0xff]  ;;  %v397_v11 = vld [vmem:[%s325_s15 + $0x30] sm:$0xff]  ;;  %v592_v52 = vunpack.c.l.s4 %v2465_v51  ;;  %v595_v56 = vshrl.u32 %v594_v53, 7  ;;  %vm608_vm1 = vcmp.lt.s32.totalorder %v594_v53, 256  ;;  %s383_s27 = scalar_lea.vmem [#allocation16], %s2788_s11 }
  0xd4   : > { %v1850_v9 = vpack.c.bf16 %v398_v7, %v396_v6  ;;  %1847 = vmatprep.subr.bf16.mxu0 %v1846_v4  ;;  %1855 = vmatprep.subr.bf16.mxu1 %v1846_v4  ;;  %v1852_v12 = vpack.c.bf16 %v397_v11, %v395_v10  ;;  %v748_v13 = vld [vmem:[%s2798_s21] sm:$0xff]  ;;  %v750_v14 = vld [vmem:[%s2798_s21 + $0x10] sm:$0xff]  ;;  %v749_v18 = vld [vmem:[%s2798_s21 + $0x8] sm:$0xff]  ;;  %s1643_s29 = sshll.u32 %s383_s27, 4  ;;  %s1845_s28 = sshll.u32 %s2443_s24, 10  ;;  %s3516_s29 = int_to_ptr.vmem [resolvable:$true] %s1643_s29 }
  0xd5   : > { %1849 = vmatpush1.bf16.msra.mxu0 %v1848_v8  ;;  %v752_v15 = vld [vmem:[%s2798_s21 + $0x20] sm:$0xff]  ;;  %1857 = vmatpush1.bf16.msra.mxu1 %v1848_v8  ;;  %v756_v16 = vpack.c.bf16 %v750_v14, %v748_v13  ;;  %v754_v17 = vld [vmem:[%s2798_s21 + $0x30] sm:$0xff]  ;;  %v751_v19 = vld [vmem:[%s2798_s21 + $0x18] sm:$0xff]  ;;  %v593_v55 = vunpack.c.0.s8 %v592_v52  ;;  %v768_v7 = vsub.s32 0, %v595_v56  ;;  %s3521_s16 = scalar_lea.hbm %s3576_s6, %s1845_s28  ;;  %s1628_s12 = scalar_lea.sflag [#allocation7], %s2785_s3 }
  0xd6   : > { %1851 = vmatprep.subr.bf16.mxu0 %v1850_v9  ;;  %1859 = vmatprep.subr.bf16.mxu1 %v1850_v9  ;;  %v757_v20 = vpack.c.bf16 %v751_v19, %v749_v18  ;;  %v753_v21 = vld [vmem:[%s2798_s21 + $0x28] sm:$0xff]  ;;  %v755_v22 = vld [vmem:[%s2798_s21 + $0x38] sm:$0xff]  ;;  %v758_v23 = vpack.c.bf16 %v754_v17, %v752_v15  ;;  %v399_v24 = vld [vmem:[#allocation10] sm:$0xff]  ;;  %s2353_s24 = scalar_lea.vmem %s3516_s29, 1024  ;;  %s2466_s9 = smov [#allocation16]  }
  0xd7   : > { %776 = vxpose.xlu0.c.b16.start [1/2] (short) %v756_v16, 128  ;;  %v759_v25 = vpack.c.bf16 %v755_v22, %v753_v21  ;;  %v400_v26 = vld [vmem:[#allocation10 + $0x8] sm:$0xff]  ;;  %v401_v27 = vld [vmem:[#allocation10 + $0x10] sm:$0xff]  ;;  %v402_v28 = vld [vmem:[#allocation10 + $0x18] sm:$0xff]  ;;  %v596_v58 = vsub.s32 %v593_v55, %v595_v56  ;;  %p2354_p1 = scmp.ne.s32.totalorder %s3516_s29, %s2353_s24  ;;  %s2357_s0 = sshll.u32 %s2466_s9, 4  ;;  %s2358_s0 = int_to_ptr.vmem [resolvable:$false] %s2357_s0 }
  0xd8   : > { %792 = vxpose.xlu1.c.b16.start [1/2] (short) %v757_v20, 128  ;;  %v513_v29 = vld [vmem:[#allocation11] sm:$0x1]  ;;  %s2359_s13 = scalar_lea.vmem %s2358_s0, 2048  ;;  %p2360_p3 = scmp.lt.s32.totalorder %s3516_s29, %s2358_s0 }
  0xd9   : > { %1853 = vmatpush1.bf16.msra.mxu0 %v1852_v12  ;;  %1861 = vmatpush1.bf16.msra.mxu1 %v1852_v12  ;;  %p2355_p8 = pnand %p2354_p1, %p2682_p5  ;;  %p2361_p11 = scmp.lt.s32.totalorder %s2359_s13, %s2353_s24 }
  0xda   : > { %1863 = vmatprep.subr.bf16.mxu1 %v1846_v4 }
  0xdb   : > { %777 = vxpose.xlu0.c.b16.end [2/2] (short) %v758_v23, 128  ;;  %p2356_p10 = pneg %p2355_p8  ;;  %p2362_p12 = por %p2361_p11, %p2360_p3 }
  0xdc   : > { %1813 = vmatmul.mubr.msk.f32.vlgmr.msra.gmra.mrb[0].mxu0 %vm403_vm0, %v399_v24  ;;  %793 = vxpose.xlu1.c.b16.end [2/2] (short) %v759_v25, 128 }
  0xdd   : > { %486 = vmatprep.mubr.f32.mxu0 %v3582_v0  ;;  %1817 = vmatmul.mubr.msk.f32.vlgmr.msra.gmra.mrb[0].mxu1 %vm403_vm0, %v513_v29  ;;  %p2363_p6 = pnand %p2362_p12, %p2356_p10 }
  0xde   : > { %1865 = vmatpush1.bf16.msra.mxu1 %v1848_v8  ;;  %715 = vmatprep.mubr.f32.mxu1 %v3582_v0 }
  0xdf   : > { %1867 = vmatprep.subr.bf16.mxu1 %v1850_v9  ;;  %v772_v9 = vsub.s32 1, %v595_v56 }
  0xe0   : > { %1814 = vmatmul.mubr.msk.f32.gmra.mrb[2].mxu0 %vm403_vm0, %v400_v26  ;;  %1988 = vset.pattern.permute.xlu1 %v2464_v30 }
  0xe1   : > { %492 = vmatprep.mubr.f32.mxu0 %v3582_v0 }
  0xe2   : > { %1869 = vmatpush1.bf16.msra.mxu1 %v1852_v12 }
  0xe4   : > { %1815 = vmatmul.mubr.msk.f32.gmra.mrb[4].mxu0 %vm403_vm0, %v401_v27  ;;  %1987 = vset.pattern.permute.xlu0 %v2464_v30 }
  0xe5   : > { %498 = vmatprep.mubr.f32.mxu0 %v3582_v0 }
  0xe8   : > { %1816 = vmatmul.mubr.msk.f32.gmra.mrb[6].mxu0 %vm403_vm0, %v402_v28 }
  0xe9   : > { %889 = vmatprep.mubr.bf16.mxu0 %v2464_v30 }
 0x13d   : > { %v784_v43 = vpop.trf.xlu0 }
 0x13e   : > { %v800_v54 = vpop.trf.xlu1 }
 0x141   : > { %v785_v44 = vpop.trf.xlu0 }
 0x142   : > { %v801_v61 = vpop.trf.xlu1 }
 0x145   : > { %v786_v45 = vpop.trf.xlu0 }
 0x146   : > { %v802_v1 = vpop.trf.xlu1 }
 0x149   : > { %v787_v46 = vpop.trf.xlu0 }
 0x14a   : > { %v803_v2 = vpop.trf.xlu1 }
 0x14d   : > { %v788_v47 = vpop.trf.xlu0 }
 0x14e   : > { %v804_v3 = vpop.trf.xlu1 }
 0x151   : > { %v789_v48 = vpop.trf.xlu0 }
 0x152   : > { %v805_v4 = vpop.trf.xlu1 }
 0x155   : > { %v790_v49 = vpop.trf.xlu0 }
 0x156   : > { %v806_v5 = vpop.trf.xlu1 }
 0x159   : > { %v791_v50 = vpop.trf.xlu0 }
 0x15a   : > { %v807_v6 = vpop.trf.xlu1 }
 0x1af   : > { %v482_v31 = vpop.f32.mrb[0].mxu0 }
 0x1b0   : > { %v484_v32 = vpop.f32.mrb[1].mxu0  ;;  %v583_v57 = vpop.f32.mrb[0].mxu1 }
 0x1b1   : > { %v585_v59 = vpop.f32.mrb[1].mxu1 }
 0x1b2   : > { %v590_v60 = vcombine.low %v583_v57, %v585_v59 }
 0x1b3   : > { %v488_v33 = vpop.f32.mrb[2].mxu0 }
 0x1b4   : > { %v505_v34 = vpack.c.bf16 %v488_v33, %v482_v31  ;;  %v490_v35 = vpop.f32.mrb[3].mxu0  ;;  %v597_v62 = vrot.slane %v590_v60, %v596_v58 }
 0x1b5   : > { %v506_v36 = vpack.c.bf16 %v490_v35, %v484_v32 }
 0x1b6   : > { %v604_v63 = vrot.slane %v597_v62, %v596_v58 }
 0x1b7   : > { %v494_v37 = vpop.f32.mrb[4].mxu0  ;;  %857 = vmatprep.subr.bf16.mxu0 %v506_v36 }
 0x1b8   : > { %v496_v38 = vpop.f32.mrb[5].mxu0  ;;  %858 = vmatpush1.bf16.msra.mxu0 %v505_v34  ;;  %610 = vst.msk [vmem:[#allocation4] sm:$0x3] %vm608_vm1, %v604_v63 }
 0x1bb   : > { %v500_v39 = vpop.f32.mrb[6].mxu0 }
 0x1bc   : > { %v507_v40 = vpack.c.bf16 %v500_v39, %v494_v37  ;;  %v502_v41 = vpop.f32.mrb[7].mxu0 }
 0x1bd   : > { %v508_v42 = vpack.c.bf16 %v502_v41, %v496_v38 }
 0x1bf   : > { %859 = vmatprep.subr.bf16.mxu0 %v508_v42  ;;  %v764_v8 = vld [vmem:[#allocation4] sm:$0x3] }
 0x1c0   : > { %860 = vmatpush1.bf16.msra.mxu0 %v507_v40  ;;  %v2869_v10 = vrot.slane %v764_v8, %v768_v7  ;;  %v2871_v11 = vrot.slane %v764_v8, %v772_v9 }
 0x1c3   : > { %1822 = vmatmul.mubr.msk.bf16.vlgmr.msra.gmra.mrb[8].mxu0 %vm403_vm0, %v784_v43 }
 0x1c4   : > { %899 = vmatprep.mubr.bf16.mxu0 %v2464_v30 }
 0x1cb   : > { %1823 = vmatmul.mubr.msk.bf16.gmra.mrb[12].mxu0 %vm403_vm0, %v785_v44 }
 0x1cc   : > { %909 = vmatprep.mubr.bf16.mxu0 %v2464_v30 }
 0x1d3   : > { %1824 = vmatmul.mubr.msk.bf16.gmra.mrb[16].mxu0 %vm403_vm0, %v786_v45 }
 0x1d4   : > { %919 = vmatprep.mubr.bf16.mxu0 %v2464_v30 }
 0x1db   : > { %1825 = vmatmul.mubr.msk.bf16.gmra.mrb[20].mxu0 %vm403_vm0, %v787_v46 }
 0x1dc   : > { %929 = vmatprep.mubr.bf16.mxu0 %v2464_v30 }
 0x1e3   : > { %1826 = vmatmul.mubr.msk.bf16.gmra.mrb[24].mxu0 %vm403_vm0, %v788_v47 }
 0x1e4   : > { %939 = vmatprep.mubr.bf16.mxu0 %v2464_v30 }
 0x1eb   : > { %1827 = vmatmul.mubr.msk.bf16.gmra.mrb[28].mxu0 %vm403_vm0, %v789_v48 }
 0x1ec   : > { %949 = vmatprep.mubr.bf16.mxu0 %v2464_v30 }
 0x1f3   : > { %1828 = vmatmul.mubr.msk.bf16.gmra.mrb[32].mxu0 %vm403_vm0, %v790_v49 }
 0x1f4   : > { %959 = vmatprep.mubr.bf16.mxu0 %v2464_v30 }
 0x1fb   : > { %1829 = vmatmul.mubr.msk.bf16.gmra.mrb[36].mxu0 %vm403_vm0, %v791_v50 }
 0x1fc   : > { %969 = vmatprep.mubr.bf16.mxu0 %v2464_v30 }
 0x203   : > { %1830 = vmatmul.mubr.msk.bf16.gmra.mrb[40].mxu0 %vm403_vm0, %v800_v54 }
 0x204   : > { %979 = vmatprep.mubr.bf16.mxu0 %v2464_v30 }
 0x20b   : > { %1831 = vmatmul.mubr.msk.bf16.gmra.mrb[44].mxu0 %vm403_vm0, %v801_v61 }
 0x20c   : > { %989 = vmatprep.mubr.bf16.mxu0 %v2464_v30 }
 0x213   : > { %1832 = vmatmul.mubr.msk.bf16.gmra.mrb[48].mxu0 %vm403_vm0, %v802_v1 }
 0x214   : > { %999 = vmatprep.mubr.bf16.mxu0 %v2464_v30 }
 0x21b   : > { %1833 = vmatmul.mubr.msk.bf16.gmra.mrb[52].mxu0 %vm403_vm0, %v803_v2 }
 0x21c   : > { %1009 = vmatprep.mubr.bf16.mxu0 %v2464_v30 }
 0x223   : > { %1834 = vmatmul.mubr.msk.bf16.gmra.mrb[56].mxu0 %vm403_vm0, %v804_v3 }
 0x224   : > { %1019 = vmatprep.mubr.bf16.mxu0 %v2464_v30 }
 0x22b   : > { %1835 = vmatmul.mubr.msk.bf16.gmra.mrb[60].mxu0 %vm403_vm0, %v805_v4 }
 0x22c   : > { %1029 = vmatprep.mubr.bf16.mxu0 %v2464_v30 }
 0x233   : > { %1836 = vmatmul.mubr.msk.bf16.gmra.mrb[64].mxu0 %vm403_vm0, %v806_v5 }
 0x234   : > { %1039 = vmatprep.mubr.bf16.mxu0 %v2464_v30 }
 0x23b   : > { %1837 = vmatmul.mubr.msk.bf16.gmra.mrb[68].mxu0 %vm403_vm0, %v807_v6 }
 0x296   : > { %v891_v12 = vpop.f32.mrb[8].mxu0 }
 0x297   : > { %v2874_v13 = vadd.f32 %v891_v12, %v2869_v10  ;;  %v893_v14 = vpop.f32.mrb[9].mxu0 }
 0x298   : > { %v2877_v15 = vadd.f32 %v893_v14, %v2871_v11  ;;  %v895_v16 = vpop.f32.mrb[10].mxu0 }
 0x299   : > { %v2880_v17 = vadd.f32 %v895_v16, %v2869_v10  ;;  %v897_v18 = vpop.f32.mrb[11].mxu0 }
 0x29a   : > { %v2883_v19 = vadd.f32 %v897_v18, %v2871_v11  ;;  %v1050_v20 = vmax.f32 %v2874_v13, %v2877_v15 }
 0x29c   : > { %1051 = vmax.xlane.f32.xlu0 %v1050_v20  ;;  %v1053_v21 = vmax.f32 %v2880_v17, %v2883_v19 }
 0x29e   : > { %v901_v22 = vpop.f32.mrb[12].mxu0  ;;  %1054 = vmax.xlane.f32.xlu1 %v1053_v21 }
 0x29f   : > { %v2890_v23 = vadd.f32 %v901_v22, %v2869_v10  ;;  %v903_v24 = vpop.f32.mrb[13].mxu0 }
 0x2a0   : > { %v2893_v25 = vadd.f32 %v903_v24, %v2871_v11  ;;  %v905_v26 = vpop.f32.mrb[14].mxu0 }
 0x2a1   : > { %v2896_v27 = vadd.f32 %v905_v26, %v2869_v10  ;;  %v907_v28 = vpop.f32.mrb[15].mxu0 }
 0x2a2   : > { %v2899_v29 = vadd.f32 %v907_v28, %v2871_v11  ;;  %v1056_v30 = vmax.f32 %v2890_v23, %v2893_v25 }
 0x2a4   : > { %1057 = vmax.xlane.f32.xlu0 %v1056_v30  ;;  %v1059_v31 = vmax.f32 %v2896_v27, %v2899_v29 }
 0x2a6   : > { %v911_v32 = vpop.f32.mrb[16].mxu0  ;;  %1060 = vmax.xlane.f32.xlu1 %v1059_v31 }
 0x2a7   : > { %v2906_v33 = vadd.f32 %v911_v32, %v2869_v10  ;;  %v913_v34 = vpop.f32.mrb[17].mxu0 }
 0x2a8   : > { %v2909_v35 = vadd.f32 %v913_v34, %v2871_v11  ;;  %v915_v36 = vpop.f32.mrb[18].mxu0 }
 0x2a9   : > { %v2912_v37 = vadd.f32 %v915_v36, %v2869_v10  ;;  %v917_v38 = vpop.f32.mrb[19].mxu0 }
 0x2aa   : > { %v2915_v39 = vadd.f32 %v917_v38, %v2871_v11  ;;  %v1062_v40 = vmax.f32 %v2906_v33, %v2909_v35 }
 0x2ac   : > { %1063 = vmax.xlane.f32.xlu0 %v1062_v40  ;;  %v1065_v41 = vmax.f32 %v2912_v37, %v2915_v39 }
 0x2ae   : > { %v921_v42 = vpop.f32.mrb[20].mxu0  ;;  %1066 = vmax.xlane.f32.xlu1 %v1065_v41 }
 0x2af   : > { %v2922_v43 = vadd.f32 %v921_v42, %v2869_v10  ;;  %v923_v44 = vpop.f32.mrb[21].mxu0 }
 0x2b0   : > { %v2925_v45 = vadd.f32 %v923_v44, %v2871_v11  ;;  %v925_v46 = vpop.f32.mrb[22].mxu0 }
 0x2b1   : > { %v2928_v47 = vadd.f32 %v925_v46, %v2869_v10  ;;  %v927_v48 = vpop.f32.mrb[23].mxu0 }
 0x2b2   : > { %v2931_v49 = vadd.f32 %v927_v48, %v2871_v11  ;;  %v1068_v50 = vmax.f32 %v2922_v43, %v2925_v45 }
 0x2b4   : > { %1069 = vmax.xlane.f32.xlu0 %v1068_v50  ;;  %v1071_v51 = vmax.f32 %v2928_v47, %v2931_v49 }
 0x2b6   : > { %v931_v52 = vpop.f32.mrb[24].mxu0  ;;  %1072 = vmax.xlane.f32.xlu1 %v1071_v51 }
 0x2b7   : > { %v2938_v53 = vadd.f32 %v931_v52, %v2869_v10  ;;  %v933_v54 = vpop.f32.mrb[25].mxu0 }
 0x2b8   : > { %v2941_v55 = vadd.f32 %v933_v54, %v2871_v11  ;;  %v935_v56 = vpop.f32.mrb[26].mxu0 }
 0x2b9   : > { %v2944_v57 = vadd.f32 %v935_v56, %v2869_v10  ;;  %v937_v58 = vpop.f32.mrb[27].mxu0 }
 0x2ba   : > { %v2947_v59 = vadd.f32 %v937_v58, %v2871_v11  ;;  %v1074_v60 = vmax.f32 %v2938_v53, %v2941_v55 }
 0x2bc   : > { %1075 = vmax.xlane.f32.xlu0 %v1074_v60  ;;  %v1077_v61 = vmax.f32 %v2944_v57, %v2947_v59 }
 0x2be   : > { %v941_v62 = vpop.f32.mrb[28].mxu0  ;;  %1078 = vmax.xlane.f32.xlu1 %v1077_v61 }
 0x2bf   : > { %v2954_v63 = vadd.f32 %v941_v62, %v2869_v10  ;;  %v943_v1 = vpop.f32.mrb[29].mxu0 }
 0x2c0   : > { %v2957_v2 = vadd.f32 %v943_v1, %v2871_v11  ;;  %v945_v3 = vpop.f32.mrb[30].mxu0 }
 0x2c1   : > { %v2960_v4 = vadd.f32 %v945_v3, %v2869_v10  ;;  %v947_v5 = vpop.f32.mrb[31].mxu0 }
 0x2c2   : > { %v2963_v6 = vadd.f32 %v947_v5, %v2871_v11  ;;  %v1080_v7 = vmax.f32 %v2954_v63, %v2957_v2 }
 0x2c4   : > { %1081 = vmax.xlane.f32.xlu0 %v1080_v7  ;;  %v1083_v8 = vmax.f32 %v2960_v4, %v2963_v6 }
 0x2c6   : > { %v951_v9 = vpop.f32.mrb[32].mxu0  ;;  %1084 = vmax.xlane.f32.xlu1 %v1083_v8 }
 0x2c7   : > { %v2970_v12 = vadd.f32 %v951_v9, %v2869_v10  ;;  %v953_v14 = vpop.f32.mrb[33].mxu0 }
 0x2c8   : > { %v2973_v16 = vadd.f32 %v953_v14, %v2871_v11  ;;  %v955_v18 = vpop.f32.mrb[34].mxu0 }
 0x2c9   : > { %v2976_v20 = vadd.f32 %v955_v18, %v2869_v10  ;;  %v957_v21 = vpop.f32.mrb[35].mxu0 }
 0x2ca   : > { %v2979_v22 = vadd.f32 %v957_v21, %v2871_v11  ;;  %v1086_v24 = vmax.f32 %v2970_v12, %v2973_v16 }
 0x2cc   : > { %1087 = vmax.xlane.f32.xlu0 %v1086_v24  ;;  %v1089_v26 = vmax.f32 %v2976_v20, %v2979_v22 }
 0x2ce   : > { %v961_v28 = vpop.f32.mrb[36].mxu0  ;;  %1090 = vmax.xlane.f32.xlu1 %v1089_v26 }
 0x2cf   : > { %v2986_v30 = vadd.f32 %v961_v28, %v2869_v10  ;;  %v963_v31 = vpop.f32.mrb[37].mxu0 }
 0x2d0   : > { %v2989_v32 = vadd.f32 %v963_v31, %v2871_v11  ;;  %v965_v34 = vpop.f32.mrb[38].mxu0 }
 0x2d1   : > { %v2992_v36 = vadd.f32 %v965_v34, %v2869_v10  ;;  %v967_v38 = vpop.f32.mrb[39].mxu0 }
 0x2d2   : > { %v2995_v40 = vadd.f32 %v967_v38, %v2871_v11  ;;  %v1092_v41 = vmax.f32 %v2986_v30, %v2989_v32 }
 0x2d4   : > { %1093 = vmax.xlane.f32.xlu0 %v1092_v41  ;;  %v1095_v42 = vmax.f32 %v2992_v36, %v2995_v40 }
 0x2d6   : > { %v971_v44 = vpop.f32.mrb[40].mxu0  ;;  %1096 = vmax.xlane.f32.xlu1 %v1095_v42 }
 0x2d7   : > { %v3002_v46 = vadd.f32 %v971_v44, %v2869_v10  ;;  %v973_v48 = vpop.f32.mrb[41].mxu0 }
 0x2d8   : > { %v3005_v50 = vadd.f32 %v973_v48, %v2871_v11  ;;  %v975_v51 = vpop.f32.mrb[42].mxu0 }
 0x2d9   : > { %v3008_v52 = vadd.f32 %v975_v51, %v2869_v10  ;;  %v977_v54 = vpop.f32.mrb[43].mxu0 }
 0x2da   : > { %v3011_v56 = vadd.f32 %v977_v54, %v2871_v11  ;;  %v1098_v58 = vmax.f32 %v3002_v46, %v3005_v50 }
 0x2dc   : > { %3637 = vst [vmem:[#allocation25_spill] sm:$0xff] %v3011_v56  ;;  %1099 = vmax.xlane.f32.xlu0 %v1098_v58  ;;  %v1101_v60 = vmax.f32 %v3008_v52, %v3011_v56 }
 0x2de   : > { %v981_v61 = vpop.f32.mrb[44].mxu0  ;;  %1102 = vmax.xlane.f32.xlu1 %v1101_v60 }
 0x2df   : > { %v3018_v62 = vadd.f32 %v981_v61, %v2869_v10  ;;  %v983_v1 = vpop.f32.mrb[45].mxu0 }
 0x2e0   : > { %v3021_v3 = vadd.f32 %v983_v1, %v2871_v11  ;;  %v985_v5 = vpop.f32.mrb[46].mxu0 }
 0x2e1   : > { %3638 = vst [vmem:[#allocation26_spill] sm:$0xff] %v3018_v62  ;;  %v3024_v7 = vadd.f32 %v985_v5, %v2869_v10  ;;  %v987_v8 = vpop.f32.mrb[47].mxu0 }
 0x2e2   : > { %3639 = vst [vmem:[#allocation27_spill] sm:$0xff] %v3021_v3  ;;  %v3027_v9 = vadd.f32 %v987_v8, %v2871_v11  ;;  %v1104_v14 = vmax.f32 %v3018_v62, %v3021_v3 }
 0x2e3   : > { %3640 = vst [vmem:[#allocation28_spill] sm:$0xff] %v3024_v7 }
 0x2e4   : > { %3641 = vst [vmem:[#allocation29_spill] sm:$0xff] %v3027_v9  ;;  %1105 = vmax.xlane.f32.xlu0 %v1104_v14  ;;  %v1107_v18 = vmax.f32 %v3024_v7, %v3027_v9 }
 0x2e6   : > { %v991_v21 = vpop.f32.mrb[48].mxu0  ;;  %1108 = vmax.xlane.f32.xlu1 %v1107_v18 }
 0x2e7   : > { %v3034_v24 = vadd.f32 %v991_v21, %v2869_v10  ;;  %v993_v26 = vpop.f32.mrb[49].mxu0 }
 0x2e8   : > { %v3037_v28 = vadd.f32 %v993_v26, %v2871_v11  ;;  %v995_v31 = vpop.f32.mrb[50].mxu0 }
 0x2e9   : > { %3642 = vst [vmem:[#allocation30_spill] sm:$0xff] %v3034_v24  ;;  %v3040_v34 = vadd.f32 %v995_v31, %v2869_v10  ;;  %v997_v38 = vpop.f32.mrb[51].mxu0 }
 0x2ea   : > { %3643 = vst [vmem:[#allocation31_spill] sm:$0xff] %v3037_v28  ;;  %v3043_v41 = vadd.f32 %v997_v38, %v2871_v11  ;;  %v1110_v42 = vmax.f32 %v3034_v24, %v3037_v28 }
 0x2eb   : > { %3644 = vst [vmem:[#allocation32_spill] sm:$0xff] %v3040_v34 }
 0x2ec   : > { %3645 = vst [vmem:[#allocation33_spill] sm:$0xff] %v3043_v41  ;;  %1111 = vmax.xlane.f32.xlu0 %v1110_v42  ;;  %v1113_v44 = vmax.f32 %v3040_v34, %v3043_v41 }
 0x2ee   : > { %v1001_v48 = vpop.f32.mrb[52].mxu0  ;;  %1114 = vmax.xlane.f32.xlu1 %v1113_v44 }
 0x2ef   : > { %v3050_v51 = vadd.f32 %v1001_v48, %v2869_v10  ;;  %v1003_v54 = vpop.f32.mrb[53].mxu0 }
 0x2f0   : > { %v3053_v58 = vadd.f32 %v1003_v54, %v2871_v11  ;;  %v1005_v60 = vpop.f32.mrb[54].mxu0 }
 0x2f1   : > { %3646 = vst [vmem:[#allocation34_spill] sm:$0xff] %v3050_v51  ;;  %v3056_v61 = vadd.f32 %v1005_v60, %v2869_v10  ;;  %v1007_v1 = vpop.f32.mrb[55].mxu0 }
 0x2f2   : > { %3647 = vst [vmem:[#allocation35_spill] sm:$0xff] %v3053_v58  ;;  %v3059_v5 = vadd.f32 %v1007_v1, %v2871_v11  ;;  %v1116_v8 = vmax.f32 %v3050_v51, %v3053_v58  ;;  %v612_v58 = vld [vmem:[#allocation13 + $0x8] sm:$0xff]  ;;  %v613_v51 = vld [vmem:[#allocation13 + $0x10] sm:$0xff] }
 0x2f3   : > { %3648 = vst [vmem:[#allocation36_spill] sm:$0xff] %v3056_v61 }
 0x2f4   : > { %3649 = vst [vmem:[#allocation37_spill] sm:$0xff] %v3059_v5  ;;  %1117 = vmax.xlane.f32.xlu0 %v1116_v8  ;;  %v1119_v14 = vmax.f32 %v3056_v61, %v3059_v5  ;;  %v611_v5 = vld [vmem:[#allocation13] sm:$0xff]  ;;  %v3652_v61 = vmov 0.0  }
 0x2f5   : > { %1818 = vmatmul.mubr.msk.f32.vlgmr.msra.gmra.mrb[2].mxu1 %vm403_vm0, %v611_v5 }
 0x2f6   : > { %v1011_v18 = vpop.f32.mrb[56].mxu0  ;;  %1120 = vmax.xlane.f32.xlu1 %v1119_v14  ;;  %721 = vmatprep.mubr.f32.mxu1 %v3652_v61 }
 0x2f7   : > { %v1013_v21 = vpop.f32.mrb[57].mxu0 }
 0x2f8   : > { %v1015_v26 = vpop.f32.mrb[58].mxu0 }
 0x2f9   : > { %v3066_v31 = vadd.f32 %v1015_v26, %v2869_v10  ;;  %v1017_v38 = vpop.f32.mrb[59].mxu0  ;;  %1819 = vmatmul.mubr.msk.f32.gmra.mrb[4].mxu1 %vm403_vm0, %v612_v58 }
 0x2fa   : > { %v3069_v42 = vadd.f32 %v1017_v38, %v2871_v11  ;;  %727 = vmatprep.mubr.f32.mxu1 %v3652_v61 }
 0x2fb   : > { %3650 = vst [vmem:[#allocation38_spill] sm:$0xff] %v3066_v31 }
 0x2fc   : > { %3651 = vst [vmem:[#allocation39_spill] sm:$0xff] %v3069_v42  ;;  %v1125_v44 = vmax.f32 %v3066_v31, %v3069_v42 }
 0x2fd   : > { %1820 = vmatmul.mubr.msk.f32.gmra.mrb[6].mxu1 %vm403_vm0, %v613_v51 }
 0x2fe   : > { %v3073_v48 = vpop.f32.mrb[60].mxu0  ;;  %1126 = vmax.xlane.f32.xlu1 %v1125_v44  ;;  %733 = vmatprep.mubr.f32.mxu1 %v3652_v61 }
 0x2ff   : > { %v3075_v54 = vpop.f32.mrb[61].mxu0 }
 0x300   : > { %v3077_v60 = vpop.f32.mrb[62].mxu0 }
 0x301   : > { %v3079_v1 = vpop.f32.mrb[63].mxu0 }
 0x306   : > { %v3081_v8 = vpop.f32.mrb[64].mxu0 }
 0x307   : > { %v3083_v14 = vpop.f32.mrb[65].mxu0 }
 0x308   : > { %v3085_v26 = vpop.f32.mrb[66].mxu0 }
 0x309   : > { %v3087_v38 = vpop.f32.mrb[67].mxu0 }
 0x30e   : > { %v3089_v0 = vpop.f32.mrb[68].mxu0 }
 0x30f   : > { %v3091_v42 = vpop.f32.mrb[69].mxu0 }
 0x310   : > { %v3093_v31 = vpop.f32.mrb[70].mxu0 }
 0x311   : > { %v3095_v44 = vpop.f32.mrb[71].mxu0 }
 0x329   : > { %v1052_v41 = vpop.xlane.xlu0 %1051 }
 0x32a   : > { %v1146_v34 = vsub.f32 %v2874_v13, %v1052_v41  ;;  %v1147_v28 = vsub.f32 %v2877_v15, %v1052_v41 }
 0x32b   : > { %v1055_v24 = vpop.xlane.xlu1 %1054 }
 0x32c   : > { %v1210_v9 = vmul.f32 1.442695, %v1146_v34  ;;  %v1212_v5 = vmul.f32 1.442695, %v1147_v28  ;;  %v1148_v7 = vsub.f32 %v2880_v17, %v1055_v24  ;;  %v1149_v3 = vsub.f32 %v2883_v19, %v1055_v24 }
 0x32e   : > { %1989 = vpow2.f32 %v1210_v9  ;;  %v1214_v58 = vmul.f32 1.442695, %v1148_v7  ;;  %v1216_v62 = vmul.f32 1.442695, %v1149_v3 }
 0x32f   : > { %1991 = vpow2.f32 %v1212_v5 }
 0x330   : > { %1993 = vpow2.f32 %v1214_v58 }
 0x331   : > { %1995 = vpow2.f32 %v1216_v62  ;;  %v1058_v51 = vpop.xlane.xlu0 %1057 }
 0x332   : > { %v1150_v61 = vsub.f32 %v2890_v23, %v1058_v51  ;;  %v1151_v13 = vsub.f32 %v2893_v25, %v1058_v51  ;;  %v3116_v23 = vadd.f32 %v1011_v18, %v2869_v10 }
 0x333   : > { %v1061_v56 = vpop.xlane.xlu1 %1060 }
 0x334   : > { %v1218_v15 = vmul.f32 1.442695, %v1150_v61  ;;  %v1220_v41 = vmul.f32 1.442695, %v1151_v13  ;;  %v1152_v28 = vsub.f32 %v2896_v27, %v1061_v56  ;;  %v1153_v17 = vsub.f32 %v2899_v29, %v1061_v56 }
 0x335   : > { %v3121_v27 = vadd.f32 %v1013_v21, %v2871_v11  ;;  %v3133_v21 = vadd.f32 %v3077_v60, %v2869_v10 }
 0x336   : > { %1997 = vpow2.f32 %v1218_v15  ;;  %v1222_v19 = vmul.f32 1.442695, %v1152_v28  ;;  %v1224_v9 = vmul.f32 1.442695, %v1153_v17 }
 0x337   : > { %1999 = vpow2.f32 %v1220_v41 }
 0x338   : > { %v3111_v3 = vpop.eup %1989  ;;  %2001 = vpow2.f32 %v1222_v19  ;;  %v3157_v19 = vadd.f32 %v3075_v54, %v2871_v11  ;;  %v3169_v54 = vadd.f32 %v3085_v26, %v2869_v10 }
 0x339   : > { %v3113_v62 = vpop.eup %1991  ;;  %2003 = vpow2.f32 %v1224_v9  ;;  %v1064_v25 = vpop.xlane.xlu0 %1063 }
 0x33a   : > { %v3118_v7 = vpop.eup %1993  ;;  %v1154_v29 = vsub.f32 %v2906_v33, %v1064_v25  ;;  %v1155_v56 = vsub.f32 %v2909_v35, %v1064_v25  ;;  %v1338_v24 = vadd.f32 %v3113_v62, %v3111_v3  ;;  %v3137_v33 = vadd.f32 %v3079_v1, %v2871_v11 }
 0x33b   : > { %v3127_v34 = vpop.eup %1995  ;;  %v1067_v5 = vpop.xlane.xlu1 %1066  ;;  %v3149_v1 = vadd.f32 %v3073_v48, %v2869_v10 }
 0x33c   : > { %v1226_v58 = vmul.f32 1.442695, %v1154_v29  ;;  %v1228_v18 = vmul.f32 1.442695, %v1155_v56  ;;  %v1156_v51 = vsub.f32 %v2912_v37, %v1067_v5  ;;  %v1157_v61 = vsub.f32 %v2915_v39, %v1067_v5  ;;  %1339 = vadd.xlane.f32.xlu0 %v1338_v24 }
 0x33d   : > { %v1341_v35 = vadd.f32 %v3127_v34, %v3118_v7  ;;  %v1122_v37 = vmax.f32 %v3116_v23, %v3121_v27  ;;  %v1131_v41 = vmax.f32 %v3133_v21, %v3137_v33 }
 0x33e   : > { %2005 = vpow2.f32 %v1226_v58  ;;  %v1230_v13 = vmul.f32 1.442695, %v1156_v51  ;;  %v1232_v15 = vmul.f32 1.442695, %v1157_v61 }
 0x33f   : > { %2007 = vpow2.f32 %v1228_v18  ;;  %1342 = vadd.xlane.f32.xlu1 %v1341_v35 }
 0x340   : > { %v3143_v39 = vpop.eup %1997  ;;  %2009 = vpow2.f32 %v1230_v13  ;;  %1123 = vmax.xlane.f32.xlu0 %v1122_v37  ;;  %v3193_v37 = vadd.f32 %v3083_v14, %v2871_v11  ;;  %v3205_v14 = vadd.f32 %v3093_v31, %v2869_v10 }
 0x341   : > { %v3145_v60 = vpop.eup %1999  ;;  %2011 = vpow2.f32 %v1232_v15  ;;  %v1070_v28 = vpop.xlane.xlu0 %1069 }
 0x342   : > { %v3153_v17 = vpop.eup %2001  ;;  %v1158_v9 = vsub.f32 %v2922_v43, %v1070_v28  ;;  %v1159_v25 = vsub.f32 %v2925_v45, %v1070_v28  ;;  %v1344_v29 = vadd.f32 %v3145_v60, %v3143_v39  ;;  %v3173_v43 = vadd.f32 %v3087_v38, %v2871_v11 }
 0x343   : > { %v3163_v48 = vpop.eup %2003  ;;  %1132 = vmax.xlane.f32.xlu1 %v1131_v41  ;;  %v1073_v56 = vpop.xlane.xlu1 %1072  ;;  %v3185_v38 = vadd.f32 %v3081_v8, %v2869_v10 }
 0x344   : > { %v1234_v24 = vmul.f32 1.442695, %v1158_v9  ;;  %v1236_v5 = vmul.f32 1.442695, %v1159_v25  ;;  %v1160_v58 = vsub.f32 %v2928_v47, %v1073_v56  ;;  %v1161_v18 = vsub.f32 %v2931_v49, %v1073_v56  ;;  %1345 = vadd.xlane.f32.xlu0 %v1344_v29 }
 0x345   : > { %v1347_v45 = vadd.f32 %v3163_v48, %v3153_v17  ;;  %v1128_v47 = vmax.f32 %v3149_v1, %v3157_v19  ;;  %v1137_v35 = vmax.f32 %v3169_v54, %v3173_v43 }
 0x346   : > { %2013 = vpow2.f32 %v1234_v24  ;;  %v1238_v51 = vmul.f32 1.442695, %v1160_v58  ;;  %v1240_v61 = vmul.f32 1.442695, %v1161_v18 }
 0x347   : > { %2015 = vpow2.f32 %v1236_v5  ;;  %1348 = vadd.xlane.f32.xlu1 %v1347_v45 }
 0x348   : > { %v3179_v49 = vpop.eup %2005  ;;  %2017 = vpow2.f32 %v1238_v51  ;;  %1129 = vmax.xlane.f32.xlu0 %v1128_v47  ;;  %v3229_v47 = vadd.f32 %v3091_v42, %v2871_v11 }
 0x349   : > { %v3181_v26 = vpop.eup %2007  ;;  %2019 = vpow2.f32 %v1240_v61  ;;  %v1076_v13 = vpop.xlane.xlu0 %1075 }
 0x34a   : > { %v3189_v15 = vpop.eup %2009  ;;  %v1162_v41 = vsub.f32 %v2938_v53, %v1076_v13  ;;  %v1163_v28 = vsub.f32 %v2941_v55, %v1076_v13  ;;  %v1350_v9 = vadd.f32 %v3181_v26, %v3179_v49  ;;  %v3209_v53 = vadd.f32 %v3095_v44, %v2871_v11 }
 0x34b   : > { %v3199_v8 = vpop.eup %2011  ;;  %1138 = vmax.xlane.f32.xlu1 %v1137_v35  ;;  %v1079_v25 = vpop.xlane.xlu1 %1078  ;;  %v3221_v44 = vadd.f32 %v3089_v0, %v2869_v10 }
 0x34c   : > { %v1242_v29 = vmul.f32 1.442695, %v1162_v41  ;;  %v1244_v56 = vmul.f32 1.442695, %v1163_v28  ;;  %v1164_v24 = vsub.f32 %v2944_v57, %v1079_v25  ;;  %v1165_v5 = vsub.f32 %v2947_v59, %v1079_v25  ;;  %1351 = vadd.xlane.f32.xlu0 %v1350_v9 }
 0x34d   : > { %v1353_v55 = vadd.f32 %v3199_v8, %v3189_v15  ;;  %v1134_v57 = vmax.f32 %v3185_v38, %v3193_v37  ;;  %v1143_v45 = vmax.f32 %v3205_v14, %v3209_v53  ;;  %v1140_v42 = vmax.f32 %v3221_v44, %v3229_v47 }
 0x34e   : > { %2021 = vpow2.f32 %v1242_v29  ;;  %v1246_v58 = vmul.f32 1.442695, %v1164_v24  ;;  %v1248_v18 = vmul.f32 1.442695, %v1165_v5 }
 0x34f   : > { %2023 = vpow2.f32 %v1244_v56  ;;  %1354 = vadd.xlane.f32.xlu1 %v1353_v55 }
 0x350   : > { %v3215_v59 = vpop.eup %2013  ;;  %2025 = vpow2.f32 %v1246_v58  ;;  %1135 = vmax.xlane.f32.xlu0 %v1134_v57 }
 0x351   : > { %v3217_v31 = vpop.eup %2015  ;;  %2027 = vpow2.f32 %v1248_v18  ;;  %v1082_v51 = vpop.xlane.xlu0 %1081 }
 0x352   : > { %v3225_v61 = vpop.eup %2017  ;;  %v1166_v35 = vsub.f32 %v2954_v63, %v1082_v51  ;;  %v1167_v13 = vsub.f32 %v2957_v2, %v1082_v51  ;;  %v1356_v41 = vadd.f32 %v3217_v31, %v3215_v59 }
 0x353   : > { %v3235_v0 = vpop.eup %2019  ;;  %1144 = vmax.xlane.f32.xlu1 %v1143_v45  ;;  %v1085_v10 = vpop.xlane.xlu1 %1084 }
 0x354   : > { %v1250_v28 = vmul.f32 1.442695, %v1166_v35  ;;  %v1252_v9 = vmul.f32 1.442695, %v1167_v13  ;;  %v1168_v25 = vsub.f32 %v2960_v4, %v1085_v10  ;;  %v1169_v29 = vsub.f32 %v2963_v6, %v1085_v10  ;;  %1357 = vadd.xlane.f32.xlu0 %v1356_v41 }
 0x355   : > { %v1359_v11 = vadd.f32 %v3235_v0, %v3225_v61 }
 0x356   : > { %2029 = vpow2.f32 %v1250_v28  ;;  %v1254_v63 = vmul.f32 1.442695, %v1168_v25  ;;  %v1256_v2 = vmul.f32 1.442695, %v1169_v29  ;;  %v614_v25 = vld [vmem:[#allocation13 + $0x18] sm:$0xff] }
 0x357   : > { %2031 = vpow2.f32 %v1252_v9  ;;  %1360 = vadd.xlane.f32.xlu1 %v1359_v11  ;;  %1821 = vmatmul.mubr.msk.f32.gmra.mrb[8].mxu1 %vm403_vm0, %v614_v25 }
 0x358   : > { %v3243_v56 = vpop.eup %2021  ;;  %2033 = vpow2.f32 %v1254_v63  ;;  %1141 = vmax.xlane.f32.xlu0 %v1140_v42 }
 0x359   : > { %v3245_v24 = vpop.eup %2023  ;;  %2035 = vpow2.f32 %v1256_v2  ;;  %v1088_v4 = vpop.xlane.xlu0 %1087 }
 0x35a   : > { %v3247_v6 = vpop.eup %2025  ;;  %v1170_v5 = vsub.f32 %v2970_v12, %v1088_v4  ;;  %v1171_v55 = vsub.f32 %v2973_v16, %v1088_v4  ;;  %v1362_v58 = vadd.f32 %v3245_v24, %v3243_v56 }
 0x35b   : > { %v3253_v18 = vpop.eup %2027  ;;  %v1091_v57 = vpop.xlane.xlu1 %1090 }
 0x35c   : > { %v1258_v45 = vmul.f32 1.442695, %v1170_v5  ;;  %v1260_v51 = vmul.f32 1.442695, %v1171_v55  ;;  %v1172_v35 = vsub.f32 %v2976_v20, %v1091_v57  ;;  %v1173_v13 = vsub.f32 %v2979_v22, %v1091_v57  ;;  %1363 = vadd.xlane.f32.xlu0 %v1362_v58 }
 0x35d   : > { %v1365_v41 = vadd.f32 %v3253_v18, %v3247_v6 }
 0x35e   : > { %2037 = vpow2.f32 %v1258_v45  ;;  %v1262_v12 = vmul.f32 1.442695, %v1172_v35  ;;  %v1264_v10 = vmul.f32 1.442695, %v1173_v13 }
 0x35f   : > { %2039 = vpow2.f32 %v1260_v51  ;;  %1366 = vadd.xlane.f32.xlu1 %v1365_v41 }
 0x360   : > { %v3259_v16 = vpop.eup %2029  ;;  %2041 = vpow2.f32 %v1262_v12 }
 0x361   : > { %v3261_v28 = vpop.eup %2031  ;;  %2043 = vpow2.f32 %v1264_v10  ;;  %v1094_v9 = vpop.xlane.xlu0 %1093 }
 0x362   : > { %v3263_v20 = vpop.eup %2033  ;;  %v1174_v22 = vsub.f32 %v2986_v30, %v1094_v9  ;;  %v1175_v29 = vsub.f32 %v2989_v32, %v1094_v9  ;;  %v1368_v11 = vadd.f32 %v3261_v28, %v3259_v16 }
 0x363   : > { %v3270_v63 = vpop.eup %2035  ;;  %v1097_v2 = vpop.xlane.xlu1 %1096 }
 0x364   : > { %v1266_v42 = vmul.f32 1.442695, %v1174_v22  ;;  %v1268_v4 = vmul.f32 1.442695, %v1175_v29  ;;  %v1176_v5 = vsub.f32 %v2992_v36, %v1097_v2  ;;  %v1177_v55 = vsub.f32 %v2995_v40, %v1097_v2  ;;  %1369 = vadd.xlane.f32.xlu0 %v1368_v11  ;;  %v3653_v22 = vld [vmem:[#allocation25_spill] sm:$0xff] }
 0x365   : > { %v1371_v30 = vadd.f32 %v3270_v63, %v3263_v20 }
 0x366   : > { %2045 = vpow2.f32 %v1266_v42  ;;  %v1270_v32 = vmul.f32 1.442695, %v1176_v5  ;;  %v1272_v58 = vmul.f32 1.442695, %v1177_v55 }
 0x367   : > { %2047 = vpow2.f32 %v1268_v4  ;;  %1372 = vadd.xlane.f32.xlu1 %v1371_v30  ;;  %v3656_v30 = vld [vmem:[#allocation27_spill] sm:$0xff] }
 0x368   : > { %v3276_v57 = vpop.eup %2037  ;;  %2049 = vpow2.f32 %v1270_v32 }
 0x369   : > { %v3278_v45 = vpop.eup %2039  ;;  %2051 = vpow2.f32 %v1272_v58  ;;  %v1100_v51 = vpop.xlane.xlu0 %1099 }
 0x36a   : > { %v3280_v35 = vpop.eup %2041  ;;  %v1178_v36 = vsub.f32 %v3002_v46, %v1100_v51  ;;  %v1179_v40 = vsub.f32 %v3005_v50, %v1100_v51  ;;  %v1374_v13 = vadd.f32 %v3278_v45, %v3276_v57 }
 0x36b   : > { %v3286_v41 = vpop.eup %2043  ;;  %v1103_v12 = vpop.xlane.xlu1 %1102 }
 0x36c   : > { %v1274_v10 = vmul.f32 1.442695, %v1178_v36  ;;  %v1276_v9 = vmul.f32 1.442695, %v1179_v40  ;;  %v1180_v25 = vsub.f32 %v3008_v52, %v1103_v12  ;;  %v1181_v29 = vsub.f32 %v3653_v22, %v1103_v12  ;;  %1375 = vadd.xlane.f32.xlu0 %v1374_v13  ;;  %v3655_v52 = vld [vmem:[#allocation26_spill] sm:$0xff]  ;;  %v3657_v12 = vld [vmem:[#allocation28_spill] sm:$0xff] }
 0x36d   : > { %v1377_v11 = vadd.f32 %v3286_v41, %v3280_v35 }
 0x36e   : > { %2053 = vpow2.f32 %v1274_v10  ;;  %v1278_v46 = vmul.f32 1.442695, %v1180_v25  ;;  %v1280_v2 = vmul.f32 1.442695, %v1181_v29 }
 0x36f   : > { %2055 = vpow2.f32 %v1276_v9  ;;  %1378 = vadd.xlane.f32.xlu1 %v1377_v11  ;;  %v3658_v9 = vld [vmem:[#allocation29_spill] sm:$0xff] }
 0x370   : > { %v3292_v50 = vpop.eup %2045  ;;  %2057 = vpow2.f32 %v1278_v46 }
 0x371   : > { %3654 = vst [vmem:[#allocation25_spill] sm:$0xff] %v3292_v50  ;;  %v3294_v42 = vpop.eup %2047  ;;  %2059 = vpow2.f32 %v1280_v2  ;;  %v1106_v4 = vpop.xlane.xlu0 %1105 }
 0x372   : > { %v3296_v5 = vpop.eup %2049  ;;  %v1182_v55 = vsub.f32 %v3655_v52, %v1106_v4  ;;  %v1183_v32 = vsub.f32 %v3656_v30, %v1106_v4  ;;  %v1380_v58 = vadd.f32 %v3294_v42, %v3292_v50 }
 0x373   : > { %v3302_v51 = vpop.eup %2051  ;;  %v1109_v36 = vpop.xlane.xlu1 %1108 }
 0x374   : > { %v1282_v40 = vmul.f32 1.442695, %v1182_v55  ;;  %v1284_v13 = vmul.f32 1.442695, %v1183_v32  ;;  %v1184_v10 = vsub.f32 %v3657_v12, %v1109_v36  ;;  %v1185_v25 = vsub.f32 %v3658_v9, %v1109_v36  ;;  %1381 = vadd.xlane.f32.xlu0 %v1380_v58  ;;  %v3662_v55 = vld [vmem:[#allocation30_spill] sm:$0xff]  ;;  %v3663_v32 = vld [vmem:[#allocation31_spill] sm:$0xff] }
 0x375   : > { %v1383_v22 = vadd.f32 %v3302_v51, %v3296_v5  ;;  %v3665_v9 = vld [vmem:[#allocation32_spill] sm:$0xff] }
 0x376   : > { %2061 = vpow2.f32 %v1282_v40  ;;  %v1286_v29 = vmul.f32 1.442695, %v1184_v10  ;;  %v1288_v11 = vmul.f32 1.442695, %v1185_v25 }
 0x377   : > { %2063 = vpow2.f32 %v1284_v13  ;;  %1384 = vadd.xlane.f32.xlu1 %v1383_v22  ;;  %v3666_v22 = vld [vmem:[#allocation33_spill] sm:$0xff] }
 0x378   : > { %v3308_v46 = vpop.eup %2053  ;;  %2065 = vpow2.f32 %v1286_v29 }
 0x379   : > { %3659 = vst [vmem:[#allocation26_spill] sm:$0xff] %v3308_v46  ;;  %v3310_v2 = vpop.eup %2055  ;;  %2067 = vpow2.f32 %v1288_v11  ;;  %v1112_v4 = vpop.xlane.xlu0 %1111 }
 0x37a   : > { %3660 = vst [vmem:[#allocation27_spill] sm:$0xff] %v3310_v2  ;;  %v3312_v52 = vpop.eup %2057  ;;  %v1186_v30 = vsub.f32 %v3662_v55, %v1112_v4  ;;  %v1187_v58 = vsub.f32 %v3663_v32, %v1112_v4  ;;  %v1386_v36 = vadd.f32 %v3310_v2, %v3308_v46  ;;  %v3669_v46 = vld [vmem:[#allocation36_spill] sm:$0xff] }
 0x37b   : > { %3661 = vst [vmem:[#allocation28_spill] sm:$0xff] %v3312_v52  ;;  %v3318_v40 = vpop.eup %2059  ;;  %v1115_v13 = vpop.xlane.xlu1 %1114 }
 0x37c   : > { %3664 = vst [vmem:[#allocation29_spill] sm:$0xff] %v3318_v40  ;;  %v1290_v12 = vmul.f32 1.442695, %v1186_v30  ;;  %v1292_v10 = vmul.f32 1.442695, %v1187_v58  ;;  %v1188_v25 = vsub.f32 %v3665_v9, %v1115_v13  ;;  %v1189_v29 = vsub.f32 %v3666_v22, %v1115_v13  ;;  %1387 = vadd.xlane.f32.xlu0 %v1386_v36  ;;  %v3667_v9 = vld [vmem:[#allocation34_spill] sm:$0xff] }
 0x37d   : > { %v1389_v11 = vadd.f32 %v3318_v40, %v3312_v52  ;;  %v3668_v36 = vld [vmem:[#allocation35_spill] sm:$0xff]  ;;  %v3670_v52 = vld [vmem:[#allocation37_spill] sm:$0xff] }
 0x37e   : > { %2069 = vpow2.f32 %v1290_v12  ;;  %v1294_v55 = vmul.f32 1.442695, %v1188_v25  ;;  %v1296_v50 = vmul.f32 1.442695, %v1189_v29 }
 0x37f   : > { %2071 = vpow2.f32 %v1292_v10  ;;  %1390 = vadd.xlane.f32.xlu1 %v1389_v11 }
 0x380   : > { %v3324_v4 = vpop.eup %2061  ;;  %2073 = vpow2.f32 %v1294_v55 }
 0x381   : > { %v3326_v32 = vpop.eup %2063  ;;  %2075 = vpow2.f32 %v1296_v50  ;;  %v1118_v30 = vpop.xlane.xlu0 %1117 }
 0x382   : > { %v3328_v58 = vpop.eup %2065  ;;  %v1190_v13 = vsub.f32 %v3667_v9, %v1118_v30  ;;  %v1191_v22 = vsub.f32 %v3668_v36, %v1118_v30  ;;  %v1392_v12 = vadd.f32 %v3326_v32, %v3324_v4 }
 0x383   : > { %v3334_v25 = vpop.eup %2067  ;;  %v1121_v10 = vpop.xlane.xlu1 %1120 }
 0x384   : > { %v1298_v29 = vmul.f32 1.442695, %v1190_v13  ;;  %v1300_v11 = vmul.f32 1.442695, %v1191_v22  ;;  %v1192_v55 = vsub.f32 %v3669_v46, %v1121_v10  ;;  %v1193_v40 = vsub.f32 %v3670_v52, %v1121_v10  ;;  %1393 = vadd.xlane.f32.xlu0 %v1392_v12  ;;  %v3674_v12 = vld [vmem:[#allocation38_spill] sm:$0xff] }
 0x385   : > { %v1395_v50 = vadd.f32 %v3334_v25, %v3328_v58 }
 0x386   : > { %2077 = vpow2.f32 %v1298_v29  ;;  %v1302_v9 = vmul.f32 1.442695, %v1192_v55  ;;  %v1304_v2 = vmul.f32 1.442695, %v1193_v40  ;;  %v3675_v29 = vld [vmem:[#allocation39_spill] sm:$0xff] }
 0x387   : > { %2079 = vpow2.f32 %v1300_v11  ;;  %1396 = vadd.xlane.f32.xlu1 %v1395_v50 }
 0x388   : > { %v3340_v30 = vpop.eup %2069  ;;  %2081 = vpow2.f32 %v1302_v9 }
 0x389   : > { %3671 = vst [vmem:[#allocation30_spill] sm:$0xff] %v3340_v30  ;;  %v3342_v36 = vpop.eup %2071  ;;  %2083 = vpow2.f32 %v1304_v2 }
 0x38a   : > { %3672 = vst [vmem:[#allocation31_spill] sm:$0xff] %v3342_v36  ;;  %v3344_v13 = vpop.eup %2073  ;;  %v1398_v46 = vadd.f32 %v3342_v36, %v3340_v30 }
 0x38b   : > { %3673 = vst [vmem:[#allocation32_spill] sm:$0xff] %v3344_v13  ;;  %v3348_v52 = vpop.eup %2075  ;;  %v1127_v22 = vpop.xlane.xlu1 %1126 }
 0x38c   : > { %v1196_v10 = vsub.f32 %v3674_v12, %v1127_v22  ;;  %v1197_v40 = vsub.f32 %v3675_v29, %v1127_v22  ;;  %1399 = vadd.xlane.f32.xlu0 %v1398_v46  ;;  %v1401_v11 = vadd.f32 %v3348_v52, %v3344_v13 }
 0x38e   : > { %v1310_v55 = vmul.f32 1.442695, %v1196_v10  ;;  %v1312_v50 = vmul.f32 1.442695, %v1197_v40  ;;  %1402 = vadd.xlane.f32.xlu1 %v1401_v11 }
 0x390   : > { %v3354_v2 = vpop.eup %2077  ;;  %2085 = vpow2.f32 %v1310_v55 }
 0x391   : > { %3676 = vst [vmem:[#allocation33_spill] sm:$0xff] %v3354_v2  ;;  %v3356_v9 = vpop.eup %2079  ;;  %2087 = vpow2.f32 %v1312_v50 }
 0x392   : > { %3677 = vst [vmem:[#allocation34_spill] sm:$0xff] %v3356_v9  ;;  %v3358_v30 = vpop.eup %2081  ;;  %v1404_v12 = vadd.f32 %v3356_v9, %v3354_v2 }
 0x393   : > { %3678 = vst [vmem:[#allocation35_spill] sm:$0xff] %v3358_v30  ;;  %v3362_v36 = vpop.eup %2083 }
 0x394   : > { %3679 = vst [vmem:[#allocation36_spill] sm:$0xff] %v3362_v36  ;;  %1405 = vadd.xlane.f32.xlu0 %v1404_v12  ;;  %v1407_v46 = vadd.f32 %v3362_v36, %v3358_v30 }
 0x396   : > { %1408 = vadd.xlane.f32.xlu1 %v1407_v46 }
 0x39a   : > { %v3366_v22 = vpop.eup %2085 }
 0x39b   : > { %3680 = vst [vmem:[#allocation37_spill] sm:$0xff] %v3366_v22  ;;  %v3368_v10 = vpop.eup %2087 }
 0x39c   : > { %3681 = vst [vmem:[#allocation38_spill] sm:$0xff] %v3368_v10  ;;  %v1413_v29 = vadd.f32 %v3368_v10, %v3366_v22 }
 0x39e   : > { %1414 = vadd.xlane.f32.xlu1 %v1413_v29 }
 0x3c9   : > { %v1340_v40 = vpop.xlane.xlu0 %1339 }
 0x3ca   : > { %2089 = vrcp.f32 %v1340_v40 }
 0x3cc   : > { %v1343_v11 = vpop.xlane.xlu1 %1342 }
 0x3cd   : > { %2091 = vrcp.f32 %v1343_v11  ;;  %v1124_v55 = vpop.xlane.xlu0 %1123 }
 0x3ce   : > { %v1194_v50 = vsub.f32 %v3116_v23, %v1124_v55  ;;  %v1195_v12 = vsub.f32 %v3121_v27, %v1124_v55 }
 0x3d0   : > { %v1306_v2 = vmul.f32 1.442695, %v1194_v50  ;;  %v1308_v30 = vmul.f32 1.442695, %v1195_v12  ;;  %v1133_v46 = vpop.xlane.xlu1 %1132 }
 0x3d1   : > { %v1200_v36 = vsub.f32 %v3133_v21, %v1133_v46  ;;  %v1201_v9 = vsub.f32 %v3137_v33, %v1133_v46  ;;  %v1346_v13 = vpop.xlane.xlu0 %1345 }
 0x3d2   : > { %2093 = vpow2.f32 %v1306_v2 }
 0x3d3   : > { %2095 = vpow2.f32 %v1308_v30  ;;  %v1318_v29 = vmul.f32 1.442695, %v1200_v36  ;;  %v1320_v22 = vmul.f32 1.442695, %v1201_v9 }
 0x3d4   : > { %v2090_v40 = vpop.eup %2089  ;;  %2097 = vrcp.f32 %v1346_v13  ;;  %v1349_v11 = vpop.xlane.xlu1 %1348 }
 0x3d5   : > { %2099 = vpow2.f32 %v1318_v29  ;;  %v1130_v10 = vpop.xlane.xlu0 %1129  ;;  %v1467_v21 = vmul.f32 %v2090_v40, %v3113_v62  ;;  %v1466_v33 = vmul.f32 %v2090_v40, %v3111_v3 }
 0x3d6   : > { %2101 = vpow2.f32 %v1320_v22  ;;  %v1198_v23 = vsub.f32 %v3149_v1, %v1130_v10  ;;  %v1199_v27 = vsub.f32 %v3157_v19, %v1130_v10 }
 0x3d7   : > { %v2092_v55 = vpop.eup %2091  ;;  %2103 = vrcp.f32 %v1349_v11 }
 0x3d8   : > { %v1314_v2 = vmul.f32 1.442695, %v1198_v23  ;;  %v1316_v30 = vmul.f32 1.442695, %v1199_v27  ;;  %v1139_v36 = vpop.xlane.xlu1 %1138  ;;  %v1469_v9 = vmul.f32 %v2092_v55, %v3127_v34  ;;  %v1468_v13 = vmul.f32 %v2092_v55, %v3118_v7 }
 0x3d9   : > { %v1204_v50 = vsub.f32 %v3169_v54, %v1139_v36  ;;  %v1205_v22 = vsub.f32 %v3173_v43, %v1139_v36  ;;  %v1352_v1 = vpop.xlane.xlu0 %1351 }
 0x3da   : > { %2105 = vpow2.f32 %v1314_v2  ;;  %v1535_v19 = vpack.c.bf16 %v1469_v9, %v1467_v21  ;;  %v1534_v10 = vpack.c.bf16 %v1468_v13, %v1466_v33 }
 0x3db   : > { %2107 = vpow2.f32 %v1316_v30  ;;  %v1326_v12 = vmul.f32 1.442695, %v1204_v50  ;;  %v1328_v62 = vmul.f32 1.442695, %v1205_v22 }
 0x3dc   : > { %v3384_v46 = vpop.eup %2093  ;;  %2109 = vrcp.f32 %v1352_v1  ;;  %v1355_v3 = vpop.xlane.xlu1 %1354  ;;  %1566 = vmatprep.subr.bf16.mxu1 %v1535_v19 }
 0x3dd   : > { %v3386_v29 = vpop.eup %2095  ;;  %2111 = vpow2.f32 %v1326_v12  ;;  %1567 = vmatpush1.bf16.xpose.msra.mxu1 %v1534_v10  ;;  %v1136_v7 = vpop.xlane.xlu0 %1135 }
 0x3de   : > { %v2098_v34 = vpop.eup %2097  ;;  %2113 = vpow2.f32 %v1328_v62  ;;  %v1202_v54 = vsub.f32 %v3185_v38, %v1136_v7  ;;  %v1203_v43 = vsub.f32 %v3193_v37, %v1136_v7  ;;  %v1410_v40 = vadd.f32 %v3386_v29, %v3384_v46 }
 0x3df   : > { %v3392_v11 = vpop.eup %2099  ;;  %2115 = vrcp.f32 %v1355_v3  ;;  %v1471_v37 = vmul.f32 %v2098_v34, %v3145_v60  ;;  %v1470_v36 = vmul.f32 %v2098_v34, %v3143_v39 }
 0x3e0   : > { %v3394_v23 = vpop.eup %2101  ;;  %v1322_v27 = vmul.f32 1.442695, %v1202_v54  ;;  %v1324_v55 = vmul.f32 1.442695, %v1203_v43  ;;  %v3396_v21 = vpop.xlane.xlu1 %1144  ;;  %1411 = vadd.xlane.f32.xlu0 %v1410_v40 }
 0x3e1   : > { %v2104_v33 = vpop.eup %2103  ;;  %v1419_v2 = vadd.f32 %v3394_v23, %v3392_v11  ;;  %v1358_v38 = vpop.xlane.xlu0 %1357 }
 0x3e2   : > { %2117 = vpow2.f32 %v1322_v27  ;;  %v1473_v30 = vmul.f32 %v2104_v33, %v3163_v48  ;;  %v1472_v9 = vmul.f32 %v2104_v33, %v3153_v17 }
 0x3e3   : > { %2119 = vpow2.f32 %v1324_v55  ;;  %1420 = vadd.xlane.f32.xlu1 %v1419_v2 }
 0x3e4   : > { %v3404_v13 = vpop.eup %2105  ;;  %v1361_v50 = vpop.xlane.xlu1 %1360  ;;  %v1537_v22 = vpack.c.bf16 %v1473_v30, %v1471_v37  ;;  %v1536_v1 = vpack.c.bf16 %v1472_v9, %v1470_v36  ;;  %2121 = vrcp.f32 %v1358_v38 }
 0x3e5   : > { %v3406_v19 = vpop.eup %2107  ;;  %v1142_v10 = vpop.xlane.xlu0 %1141  ;;  %2123 = vrcp.f32 %v1361_v50 }
 0x3e6   : > { %v2110_v12 = vpop.eup %2109  ;;  %1568 = vmatprep.subr.bf16.mxu1 %v1537_v22  ;;  %v1206_v60 = vsub.f32 %v3221_v44, %v1142_v10  ;;  %v1207_v48 = vsub.f32 %v3229_v47, %v1142_v10  ;;  %v1416_v39 = vadd.f32 %v3406_v19, %v3404_v13 }
 0x3e7   : > { %v3412_v17 = vpop.eup %2111  ;;  %1569 = vmatpush1.bf16.xpose.msra.mxu1 %v1536_v1  ;;  %v1475_v44 = vmul.f32 %v2110_v12, %v3181_v26  ;;  %v1474_v40 = vmul.f32 %v2110_v12, %v3179_v49 }
 0x3e8   : > { %v3414_v62 = vpop.eup %2113  ;;  %v1330_v3 = vmul.f32 1.442695, %v1206_v60  ;;  %v1332_v7 = vmul.f32 1.442695, %v1207_v48  ;;  %1417 = vadd.xlane.f32.xlu0 %v1416_v39 }
 0x3e9   : > { %v2116_v34 = vpop.eup %2115  ;;  %v1425_v54 = vadd.f32 %v3414_v62, %v3412_v17  ;;  %v1364_v43 = vpop.xlane.xlu0 %1363 }
 0x3ea   : > { %2125 = vpow2.f32 %v1330_v3  ;;  %v1477_v47 = vmul.f32 %v2116_v34, %v3199_v8  ;;  %v1476_v27 = vmul.f32 %v2116_v34, %v3189_v15 }
 0x3eb   : > { %2127 = vpow2.f32 %v1332_v7  ;;  %1426 = vadd.xlane.f32.xlu1 %v1425_v54  ;;  %v616_v7 = vld [vmem:[#allocation14 + $0x8] sm:$0xff]  ;;  %v3442_v54 = vpop.f32.mrb[2].mxu1 }
 0x3ec   : > { %v3422_v55 = vpop.eup %2117  ;;  %2129 = vrcp.f32 %v1364_v43  ;;  %v1367_v33 = vpop.xlane.xlu1 %1366  ;;  %v1539_v2 = vpack.c.bf16 %v1477_v47, %v1475_v44  ;;  %v1538_v38 = vpack.c.bf16 %v1476_v27, %v1474_v40 }
 0x3ed   : > { %v3424_v37 = vpop.eup %2119  ;;  %2131 = vrcp.f32 %v1367_v33  ;;  %v3444_v44 = vpop.f32.mrb[3].mxu1 }
 0x3ee   : > { %1570 = vmatprep.subr.bf16.mxu1 %v1539_v2  ;;  %v1422_v26 = vadd.f32 %v3424_v37, %v3422_v55  ;;  %v2122_v8 = vpop.eup %2121  ;;  %v3446_v27 = vpop.f32.mrb[4].mxu1 }
 0x3ef   : > { %1571 = vmatpush1.bf16.xpose.msra.mxu1 %v1538_v38  ;;  %v2124_v49 = vpop.eup %2123  ;;  %v1479_v30 = vmul.f32 %v2122_v8, %v3217_v31  ;;  %v1478_v9 = vmul.f32 %v2122_v8, %v3215_v59 }
 0x3f0   : > { %1423 = vadd.xlane.f32.xlu0 %v1422_v26  ;;  %v1481_v36 = vmul.f32 %v2124_v49, %v3235_v0  ;;  %v1480_v50 = vmul.f32 %v2124_v49, %v3225_v61 }
 0x3f1   : > { %v1370_v15 = vpop.xlane.xlu0 %1369 }
 0x3f2   : > { %2133 = vrcp.f32 %v1370_v15  ;;  %v1541_v10 = vpack.c.bf16 %v1481_v36, %v1479_v30  ;;  %v1540_v12 = vpack.c.bf16 %v1480_v50, %v1478_v9 }
 0x3f4   : > { %v3432_v22 = vpop.eup %2125  ;;  %v1373_v1 = vpop.xlane.xlu1 %1372  ;;  %1572 = vmatprep.subr.bf16.mxu1 %v1541_v10 }
 0x3f5   : > { %v3434_v60 = vpop.eup %2127  ;;  %2135 = vrcp.f32 %v1373_v1 }
 0x3f6   : > { %v2130_v48 = vpop.eup %2129  ;;  %v1428_v31 = vadd.f32 %v3434_v60, %v3432_v22 }
 0x3f7   : > { %v2132_v39 = vpop.eup %2131  ;;  %1573 = vmatpush1.bf16.xpose.msra.mxu1 %v1540_v12  ;;  %v1483_v59 = vmul.f32 %v2130_v48, %v3245_v24  ;;  %v1482_v34 = vmul.f32 %v2130_v48, %v3243_v56 }
 0x3f8   : > { %1429 = vadd.xlane.f32.xlu0 %v1428_v31  ;;  %v1485_v61 = vmul.f32 %v2132_v39, %v3253_v18  ;;  %v1484_v0 = vmul.f32 %v2132_v39, %v3247_v6  ;;  %v617_v18 = vld [vmem:[#allocation14 + $0x10] sm:$0xff]  ;;  %v3448_v6 = vpop.f32.mrb[5].mxu1  ;;  %v615_v39 = vld [vmem:[#allocation14] sm:$0xff] }
 0x3f9   : > { %v1376_v3 = vpop.xlane.xlu0 %1375  ;;  %v3450_v33 = vpop.f32.mrb[6].mxu1 }
 0x3fa   : > { %v1543_v43 = vpack.c.bf16 %v1485_v61, %v1483_v59  ;;  %2137 = vrcp.f32 %v1376_v3  ;;  %v1542_v47 = vpack.c.bf16 %v1484_v0, %v1482_v34  ;;  %v3452_v2 = vpop.f32.mrb[7].mxu1  ;;  %v1209_v59 = vsub.f32 %v3209_v53, %v3396_v21  ;;  %v3682_v34 = vld [vmem:[#allocation25_spill] sm:$0xff] }
 0x3fc   : > { %626 = vperm.xlu1 %1988, %v616_v7   ;;  %v1379_v40 = vpop.xlane.xlu1 %1378  ;;  %1574 = vmatprep.subr.bf16.mxu1 %v1543_v43  ;;  %v2134_v24 = vpop.eup %2133  ;;  %v1336_v0 = vmul.f32 1.442695, %v1209_v59 }
 0x3fd   : > { %2139 = vrcp.f32 %v1379_v40  ;;  %v1487_v38 = vmul.f32 %v2134_v24, %v3261_v28  ;;  %v1486_v15 = vmul.f32 %v2134_v24, %v3259_v16  ;;  %v1208_v16 = vsub.f32 %v3205_v14, %v3396_v21 }
 0x3ff   : > { %v2136_v56 = vpop.eup %2135  ;;  %1575 = vmatpush1.bf16.xpose.msra.mxu1 %v1542_v47 }
 0x400   : > { %631 = vperm.xlu1 %1988, %v617_v18   ;;  %v1489_v26 = vmul.f32 %v2136_v56, %v3270_v63  ;;  %v1488_v8 = vmul.f32 %v2136_v56, %v3263_v20  ;;  %v3683_v18 = vld [vmem:[#allocation27_spill] sm:$0xff]  ;;  %v3684_v56 = vld [vmem:[#allocation29_spill] sm:$0xff] }
 0x401   : > { %v1382_v49 = vpop.xlane.xlu0 %1381 }
 0x402   : > { %v1545_v30 = vpack.c.bf16 %v1489_v26, %v1487_v38  ;;  %2141 = vrcp.f32 %v1382_v49  ;;  %v1544_v36 = vpack.c.bf16 %v1488_v8, %v1486_v15  ;;  %v3685_v38 = vld [vmem:[#allocation28_spill] sm:$0xff]  ;;  %v3686_v8 = vld [vmem:[#allocation26_spill] sm:$0xff] }
 0x404   : > { %v1385_v9 = vpop.xlane.xlu1 %1384  ;;  %1576 = vmatprep.subr.bf16.mxu1 %v1545_v30  ;;  %v2138_v50 = vpop.eup %2137 }
 0x405   : > { %2143 = vrcp.f32 %v1385_v9  ;;  %v1491_v10 = vmul.f32 %v2138_v50, %v3278_v45  ;;  %v1490_v20 = vmul.f32 %v2138_v50, %v3276_v57 }
 0x407   : > { %v2140_v1 = vpop.eup %2139  ;;  %1577 = vmatpush1.bf16.xpose.msra.mxu1 %v1544_v36 }
 0x408   : > { %v1493_v28 = vmul.f32 %v2140_v1, %v3286_v41  ;;  %v1492_v63 = vmul.f32 %v2140_v1, %v3280_v35  ;;  %v1334_v41 = vmul.f32 1.442695, %v1208_v16 }
 0x409   : > { %v1388_v12 = vpop.xlane.xlu0 %1387 }
 0x40a   : > { %v1547_v48 = vpack.c.bf16 %v1493_v28, %v1491_v10  ;;  %2145 = vrcp.f32 %v1388_v12  ;;  %v1546_v31 = vpack.c.bf16 %v1492_v63, %v1490_v20 }
 0x40c   : > { %v1391_v61 = vpop.xlane.xlu1 %1390  ;;  %1578 = vmatprep.subr.bf16.mxu1 %v1547_v48  ;;  %v2142_v45 = vpop.eup %2141 }
 0x40d   : > { %2147 = vrcp.f32 %v1391_v61  ;;  %v1495_v57 = vmul.f32 %v2142_v45, %v3294_v42  ;;  %v1494_v43 = vmul.f32 %v2142_v45, %v3682_v34  ;;  %v3690_v34 = vld [vmem:[#allocation34_spill] sm:$0xff] }
 0x40e   : > { %621 = vperm.xlu0 %1987, %v615_v39   ;;  %2149 = vpow2.f32 %v1334_v41  ;;  %v3688_v41 = vld [vmem:[#allocation32_spill] sm:$0xff] }
 0x40f   : > { %v2144_v35 = vpop.eup %2143  ;;  %1579 = vmatpush1.bf16.xpose.msra.mxu1 %v1546_v31 }
 0x410   : > { %v1497_v14 = vmul.f32 %v2144_v35, %v3302_v51  ;;  %v1496_v3 = vmul.f32 %v2144_v35, %v3296_v5 }
 0x411   : > { %v1394_v7 = vpop.xlane.xlu0 %1393 }
 0x412   : > { %v1549_v53 = vpack.c.bf16 %v1497_v14, %v1495_v57  ;;  %2151 = vrcp.f32 %v1394_v7  ;;  %v1548_v21 = vpack.c.bf16 %v1496_v3, %v1494_v43 }
 0x413   : > { %2153 = vpow2.f32 %v1336_v0  ;;  %v3689_v0 = vld [vmem:[#allocation30_spill] sm:$0xff] }
 0x414   : > { %v1397_v47 = vpop.xlane.xlu1 %1396  ;;  %1580 = vmatprep.subr.bf16.mxu1 %v1549_v53  ;;  %v2146_v40 = vpop.eup %2145  ;;  %v3691_v53 = vld [vmem:[#allocation36_spill] sm:$0xff] }
 0x415   : > { %2155 = vrcp.f32 %v1397_v47  ;;  %v1499_v42 = vmul.f32 %v2146_v40, %v3683_v18  ;;  %v1498_v49 = vmul.f32 %v2146_v40, %v3686_v8  ;;  %v3692_v47 = vld [vmem:[#allocation35_spill] sm:$0xff]  ;;  %v3693_v18 = vld [vmem:[#allocation33_spill] sm:$0xff] }
 0x417   : > { %v2148_v24 = vpop.eup %2147  ;;  %1581 = vmatpush1.bf16.xpose.msra.mxu1 %v1548_v21 }
 0x418   : > { %v1501_v51 = vmul.f32 %v2148_v24, %v3684_v56  ;;  %v1500_v5 = vmul.f32 %v2148_v24, %v3685_v38  ;;  %v3474_v9 = vpop.eup %2149 }
 0x419   : > { %v1400_v26 = vpop.xlane.xlu0 %1399 }
 0x41a   : > { %2157 = vrcp.f32 %v1400_v26  ;;  %v1551_v15 = vpack.c.bf16 %v1501_v51, %v1499_v42  ;;  %v1550_v36 = vpack.c.bf16 %v1500_v5, %v1498_v49 }
 0x41b   : > { %v1403_v30 = vpop.xlane.xlu1 %1402 }
 0x41c   : > { %2159 = vrcp.f32 %v1403_v30  ;;  %1582 = vmatprep.subr.bf16.mxu1 %v1551_v15  ;;  %v2152_v50 = vpop.eup %2151 }
 0x41d   : > { %v3476_v1 = vpop.eup %2153  ;;  %v1503_v28 = vmul.f32 %v2152_v50, %v3326_v32  ;;  %v1502_v16 = vmul.f32 %v2152_v50, %v3324_v4  ;;  %v3687_v32 = vld [vmem:[#allocation31_spill] sm:$0xff] }
 0x41e   : > { %v1431_v48 = vadd.f32 %v3476_v1, %v3474_v9 }
 0x41f   : > { %v2156_v10 = vpop.eup %2155  ;;  %1583 = vmatpush1.bf16.xpose.msra.mxu1 %v1550_v36 }
 0x420   : > { %v1505_v63 = vmul.f32 %v2156_v10, %v3334_v25  ;;  %v1504_v12 = vmul.f32 %v2156_v10, %v3328_v58  ;;  %v3694_v10 = vld [vmem:[#allocation38_spill] sm:$0xff] }
 0x421   : > { %v1406_v20 = vpop.xlane.xlu0 %1405 }
 0x422   : > { %2161 = vrcp.f32 %v1406_v20  ;;  %v1553_v31 = vpack.c.bf16 %v1505_v63, %v1503_v28  ;;  %v1552_v59 = vpack.c.bf16 %v1504_v12, %v1502_v16  ;;  %v3695_v12 = vld [vmem:[#allocation37_spill] sm:$0xff] }
 0x423   : > { %v1409_v39 = vpop.xlane.xlu1 %1408 }
 0x424   : > { %v2158_v61 = vpop.eup %2157  ;;  %1432 = vadd.xlane.f32.xlu1 %v1431_v48  ;;  %2163 = vrcp.f32 %v1409_v39  ;;  %1584 = vmatprep.subr.bf16.mxu1 %v1553_v31 }
 0x425   : > { %v1507_v25 = vmul.f32 %v2158_v61, %v3687_v32  ;;  %v1506_v57 = vmul.f32 %v2158_v61, %v3689_v0 }
 0x426   : > { %v2160_v45 = vpop.eup %2159 }
 0x427   : > { %1585 = vmatpush1.bf16.xpose.msra.mxu1 %v1552_v59  ;;  %v1509_v58 = vmul.f32 %v2160_v45, %v3348_v52  ;;  %v1508_v35 = vmul.f32 %v2160_v45, %v3688_v41  ;;  %v618_v52 = vld [vmem:[#allocation14 + $0x18] sm:$0xff] }
 0x429   : > { %v1555_v4 = vpack.c.bf16 %v1509_v58, %v1507_v25  ;;  %v1554_v14 = vpack.c.bf16 %v1508_v35, %v1506_v57 }
 0x42a   : > { %v735_v51 = vpop.f32.mrb[8].mxu1 }
 0x42b   : > { %1586 = vmatprep.subr.bf16.mxu1 %v1555_v4  ;;  %v737_v38 = vpop.f32.mrb[9].mxu1  ;;  %v1415_v5 = vpop.xlane.xlu1 %1414 }
 0x42c   : > { %v2162_v3 = vpop.eup %2161  ;;  %2165 = vrcp.f32 %v1415_v5 }
 0x42d   : > { %v1511_v43 = vmul.f32 %v2162_v3, %v3690_v34  ;;  %v1510_v42 = vmul.f32 %v2162_v3, %v3693_v18 }
 0x42e   : > { %v2164_v7 = vpop.eup %2163 }
 0x42f   : > { %1587 = vmatpush1.bf16.xpose.msra.mxu1 %v1554_v14  ;;  %v1513_v21 = vmul.f32 %v2164_v7, %v3691_v53  ;;  %v1512_v40 = vmul.f32 %v2164_v7, %v3692_v47 }
 0x431   : > { %v1557_v24 = vpack.c.bf16 %v1513_v21, %v1511_v43  ;;  %v1556_v56 = vpack.c.bf16 %v1512_v40, %v1510_v42 }
 0x433   : > { %1588 = vmatprep.subr.bf16.mxu1 %v1557_v24 }
 0x435   : > { %636 = vperm.xlu1 %1988, %v618_v52  }
 0x436   : > { %v2166_v15 = vpop.eup %2165 }
 0x437   : > { %1589 = vmatpush1.bf16.xpose.msra.mxu1 %v1556_v56  ;;  %v1517_v28 = vmul.f32 %v2166_v15, %v3694_v10  ;;  %v1516_v20 = vmul.f32 %v2166_v15, %v3695_v12 }
 0x46d   : > { %v1412_v26 = vpop.xlane.xlu0 %1411 }
 0x46e   : > { %2167 = vrcp.f32 %v1412_v26 }
 0x470   : > { %v1421_v8 = vpop.xlane.xlu1 %1420 }
 0x471   : > { %2169 = vrcp.f32 %v1421_v8 }
 0x475   : > { %v1418_v49 = vpop.xlane.xlu0 %1417 }
 0x476   : > { %2171 = vrcp.f32 %v1418_v49 }
 0x478   : > { %v2168_v30 = vpop.eup %2167  ;;  %v1427_v36 = vpop.xlane.xlu1 %1426 }
 0x479   : > { %v1515_v50 = vmul.f32 %v2168_v30, %v3386_v29  ;;  %v1514_v63 = vmul.f32 %v2168_v30, %v3384_v46  ;;  %2173 = vrcp.f32 %v1427_v36 }
 0x47b   : > { %v1559_v16 = vpack.c.bf16 %v1517_v28, %v1515_v50  ;;  %v1558_v48 = vpack.c.bf16 %v1516_v20, %v1514_v63  ;;  %v2170_v39 = vpop.eup %2169 }
 0x47c   : > { %v1521_v45 = vmul.f32 %v2170_v39, %v3394_v23  ;;  %v1520_v32 = vmul.f32 %v2170_v39, %v3392_v11  ;;  %v627_v23 = vpop.permute.xlu1 %626 }
 0x47d   : > { %1590 = vmatprep.subr.bf16.mxu1 %v1559_v16  ;;  %v1424_v31 = vpop.xlane.xlu0 %1423  ;;  %v724_v3 = vadd.f32 %v3446_v27, %v627_v23  ;;  %v726_v7 = vadd.f32 %v3448_v6, %v627_v23 }
 0x47e   : > { %2175 = vrcp.f32 %v1424_v31  ;;  %1591 = vmatpush1.bf16.xpose.msra.mxu1 %v1558_v48 }
 0x480   : > { %v2172_v59 = vpop.eup %2171 }
 0x481   : > { %v1519_v61 = vmul.f32 %v2172_v59, %v3406_v19  ;;  %v1518_v29 = vmul.f32 %v2172_v59, %v3404_v13 }
 0x483   : > { %v1561_v46 = vpack.c.bf16 %v1521_v45, %v1519_v61  ;;  %v1560_v25 = vpack.c.bf16 %v1520_v32, %v1518_v29  ;;  %v2174_v58 = vpop.eup %2173 }
 0x484   : > { %v1525_v0 = vmul.f32 %v2174_v58, %v3414_v62  ;;  %v1524_v19 = vmul.f32 %v2174_v58, %v3412_v17 }
 0x485   : > { %1592 = vmatprep.subr.bf16.mxu1 %v1561_v46  ;;  %v1430_v35 = vpop.xlane.xlu0 %1429 }
 0x486   : > { %1593 = vmatpush1.bf16.xpose.msra.mxu1 %v1560_v25  ;;  %2177 = vrcp.f32 %v1430_v35 }
 0x488   : > { %v2176_v41 = vpop.eup %2175 }
 0x489   : > { %v1523_v4 = vmul.f32 %v2176_v41, %v3424_v37  ;;  %v1522_v57 = vmul.f32 %v2176_v41, %v3422_v55  ;;  %v632_v55 = vpop.permute.xlu1 %631 }
 0x48a   : > { %v730_v21 = vadd.f32 %v3450_v33, %v632_v55  ;;  %v732_v47 = vadd.f32 %v3452_v2, %v632_v55 }
 0x48b   : > { %v1563_v14 = vpack.c.bf16 %v1525_v0, %v1523_v4  ;;  %v1562_v13 = vpack.c.bf16 %v1524_v19, %v1522_v57 }
 0x48d   : > { %1594 = vmatprep.subr.bf16.mxu1 %v1563_v14  ;;  %v622_v11 = vpop.permute.xlu0 %621 }
 0x48e   : > { %v718_v34 = vadd.f32 %v3442_v54, %v622_v11  ;;  %v720_v43 = vadd.f32 %v3444_v44, %v622_v11  ;;  %1595 = vmatpush1.bf16.xpose.msra.mxu1 %v1562_v13 }
 0x490   : > { %v740_v37 = vpack.c.bf16 %v724_v3, %v718_v34  ;;  %v741_v62 = vpack.c.bf16 %v726_v7, %v720_v43  ;;  %v2178_v24 = vpop.eup %2177 }
 0x491   : > { %v1527_v18 = vmul.f32 %v2178_v24, %v3434_v60  ;;  %v1526_v52 = vmul.f32 %v2178_v24, %v3432_v22 }
 0x492   : > { %1598 = vmatprep.mubr.bf16.mxu1 %v741_v62 }
 0x4b1   : > { %v1433_v17 = vpop.xlane.xlu1 %1432 }
 0x4b2   : > { %2179 = vrcp.f32 %v1433_v17 }
 0x4b5   : > { %v637_v53 = vpop.permute.xlu1 %636 }
 0x4b6   : > { %v736_v27 = vadd.f32 %v735_v51, %v637_v53  ;;  %v738_v40 = vadd.f32 %v737_v38, %v637_v53 }
 0x4b8   : > { %v742_v6 = vpack.c.bf16 %v736_v27, %v730_v21  ;;  %v743_v54 = vpack.c.bf16 %v738_v40, %v732_v47 }
 0x4bc   : > { %v2180_v44 = vpop.eup %2179 }
 0x4bd   : > { %v1529_v42 = vmul.f32 %v2180_v44, %v3476_v1  ;;  %v1528_v56 = vmul.f32 %v2180_v44, %v3474_v9 }
 0x4bf   : > { %v1565_v5 = vpack.c.bf16 %v1529_v42, %v1527_v18  ;;  %v1564_v26 = vpack.c.bf16 %v1528_v56, %v1526_v52 }
 0x4c1   : > { %1596 = vmatprep.subr.bf16.mxu1 %v1565_v5 }
 0x4c2   : > { %1597 = vmatpush1.bf16.xpose.msra.mxu1 %v1564_v26 }
 0x4c9   : > { %1599 = vmatmul.mubr.bf16.vlgmr.msra.gmra.mrb[12].mxu1 %v740_v37 }
 0x4ca   : > { %1608 = vmatprep.mubr.bf16.mxu1 %v743_v54 }
 0x4d1   : > { %1609 = vmatmul.mubr.bf16.gmra.mrb[16].mxu1 %v742_v6 }
 0x59c   : > { %v1600_v33 = vpop.f32.mrb[12].mxu1 }
 0x59d   : > { %1619 = vst [vmem:[%s383_s27] sm:$0xff] %v1600_v33  ;;  %v1602_v2 = vpop.f32.mrb[13].mxu1 }
 0x59e   : > { %1620 = vst [vmem:[%s383_s27 + $0x8] sm:$0xff] %v1602_v2  ;;  %v1604_v60 = vpop.f32.mrb[14].mxu1 }
 0x59f   : > { %1621 = vst [vmem:[%s383_s27 + $0x10] sm:$0xff] %v1604_v60  ;;  %v1606_v1 = vpop.f32.mrb[15].mxu1 }
 0x5a0   : > { %1622 = vst [vmem:[%s383_s27 + $0x18] sm:$0xff] %v1606_v1 }
 0x5a4   : > { %v1610_v22 = vpop.f32.mrb[16].mxu1 }
 0x5a5   : > { %1623 = vst [vmem:[%s383_s27 + $0x20] sm:$0xff] %v1610_v22  ;;  %v1612_v9 = vpop.f32.mrb[17].mxu1 }
 0x5a6   : > { %1624 = vst [vmem:[%s383_s27 + $0x28] sm:$0xff] %v1612_v9  ;;  %v1614_v51 = vpop.f32.mrb[18].mxu1 }
 0x5a7   : > { %1625 = vst [vmem:[%s383_s27 + $0x30] sm:$0xff] %v1614_v51  ;;  %v1616_v38 = vpop.f32.mrb[19].mxu1 }
 0x5a8   : > { %1626 = vst [vmem:[%s383_s27 + $0x38] sm:$0xff] %v1616_v38 }
 0x5a9   : > { %2366 = shalt.err (!%p2363_p6)
}
 0x5aa   : > { %s2367_s19 = scalar_lea.hbm %s3521_s16, 1024  ;;  %s2371_s14 = scalar_lea.hbm %s3576_s6, 2048 }
 0x5ab   : > { %p2368_p7 = scmp.ne.s32.totalorder %s3521_s16, %s2367_s19  ;;  %p2372_p2 = scmp.lt.u32.totalorder %s3521_s16, %s3576_s6 }
 0x5ac   : > { %p2373_p13 = scmp.lt.u32.totalorder %s2371_s14, %s2367_s19  ;;  %p2375_p1 = scmp.lt.u32.totalorder %s2367_s19, %s3521_s16 }
 0x5ad   : > { %p2369_p9 = pnand %p2368_p7, %p2682_p5 }
 0x5ae   : > { %p2374_p4 = por %p2373_p13, %p2372_p2 }
 0x5af   : > { %p2370_p0 = pneg %p2369_p9 }
 0x5b0   : > { %p2376_p8 = por %p2375_p1, %p2374_p4 }
 0x5b2   : > { %p2377_p10 = pnand %p2376_p8, %p2370_p0 }
 0x5b4   : > { %2380 = shalt.err (!%p2377_p10)
}
 0x5b5   : > { %s2467_s7 = smov 256   ;;  %s2468_s21 = smov 16  }
 0x5b6   : > { %1890 = dma.vmem_to_hbm [thread:$0]  (%p2682_p5), %s3516_s29, 1024, %s3521_s16, %s1628_s12, %s2467_s7, %s2467_s7, %s2468_s21  }
 0x5b7 PF: > { %s3696_s27 = sld [smem:[#allocation23_spill]]  ;;  %s3697_s28 = sld [smem:[#allocation24_spill]] }
 0x5b8   : > { %p3699_p11 = scmp.ge.s32.totalorder %s2451_s26, 2 }
 0x5bd   : > { %s1658_s20 = sand.u32 1, %s3696_s27   ;;  %p3698_p3 = scmp.ne.s32.totalorder %s3697_s28, 0 }
 0x5be   : > { %s1659_s8 = scalar_lea.sflag [#allocation7], %s1658_s20 }
 0x5bf   : > { %p1913_p12 = pnand %p3699_p11, %p3698_p3 }
 0x5c1   : > { %2426 = dma.done.wait (!%p1913_p12), %s1659_s8, 1024  }
 0x5c2   : > { %2428 = vsyncadd (!%p1913_p12), %s1659_s8, 4294966272  ;;  %s27_s26 = sadd.s32 1, %s2451_s26   ;;  %s3700_s21 = smov %s2435_s22 }
 0x5c3   : > { %p24_p6 = scmp.ge.s32.totalorder %s27_s26, 4   ;;  %s3701_s22 = smov %s2439_s23 }
 0x5c4   : > { %s3702_s23 = smov %s2693_s17  ;;  %s3703_s24 = smov %s2447_s25 }
 0x5c5   : > { %s3704_s25 = smov %s3706_s10  ;;  %26 = sbr.rel (!%p24_p6) target bundleno = 14 (0xe), region = 122 }
 0x5cc   :  { %1664 = vsyncpa [#allocation6], 1 }
 0x5cd   :  { %1666 = vsyncpa [#allocation6 + $0x1], 1 }
 0x5ce   :  { %1667 = vsyncpa [#allocation9], 1 }
 0x5cf   :  { %1669 = vsyncpa [#allocation9 + $0x1], 1 }
 0x5d0   :  { %1670 = vsyncpa [#allocation12], 1 }
 0x5d1   :  { %1671 = vsyncpa [#allocation15], 1 }
 0x5d2   :  { %1672 = vsyncpa [#allocation7], 1 }
 0x5d3   :  { %1674 = vsyncpa [#allocation7 + $0x1], 1 }

</bundles_post_ra>
